<compile_context>
chip_gen: v6e
topology: v6e:2x2x1
jax: 0.10.0
libtpu: 0.0.40
codegen_flags: <defaults>
</compile_context>

<pallas_src>
import math

import jax
import jax.numpy as jnp
from jax.experimental import pallas as pl
from jax.experimental.pallas import tpu as pltpu


def _make_kernel(num_heads: int, d_model: int, eps: float):
    dk = d_model // num_heads
    scale = 1.0 / math.sqrt(dk)

    def layer_norm(v, alpha, bias):
        # torch: alpha * (x - mean) / (std + eps) + bias, std unbiased (N-1).
        mean = jnp.mean(v, axis=-1, keepdims=True)
        cen = v - mean
        var = jnp.sum(cen * cen, axis=-1, keepdims=True) * (1.0 / (d_model - 1))
        std = jnp.sqrt(var)
        return alpha * (cen / (std + eps)) + bias        # exact (matches torch)

    def kernel(x_ref, mask_ref,
               wq_ref, wk_ref, wv_ref, wo_ref,
               w1_ref, b1_ref, w2_ref, b2_ref,
               ln_ref, fln_ref,
               o_ref, ctx_scr):
        layer = pl.program_id(1)
        num_layers = pl.num_programs(1)

        tb, s, d = o_ref.shape
        rows = tb * s

        # Activations are carried across the innermost layer axis in the
        # resident output block (same block index every layer => stays in
        # VMEM; HBM writeback only after the last layer of this batch tile).
        @pl.when(layer == 0)
        def _():
            o_ref[...] = x_ref[...].astype(o_ref.dtype)

        x = o_ref[...].astype(jnp.float32)               # (tb, S, D)

        # Key-padding mask, one compare per layer step; broadcast over queries.
        masked_out = mask_ref[...] == 0.0                # (tb, 1, S) bool

        def project(v2d, w_ref):
            w = w_ref[0]                                 # (D, out) bf16
            return jnp.dot(v2d.astype(w.dtype), w,
                           preferred_element_type=jnp.float32)

        # -------- residual 1: pre-LN multi-head self-attention --------
        xn = layer_norm(x, ln_ref[layer, 0], ln_ref[layer, 1])
        xn2 = xn.reshape(rows, d)                        # fold batch into rows
        # 1/sqrt(dk) folded into q once (instead of per-head logit scaling).
        q = (project(xn2, wq_ref) * scale).reshape(tb, s, d)
        k = project(xn2, wk_ref).reshape(tb, s, d)
        v = project(xn2, wv_ref).reshape(tb, s, d)

        for h in range(num_heads):
            sl = slice(h * dk, (h + 1) * dk)
            qh, kh, vh = q[:, :, sl], k[:, :, sl], v[:, :, sl]   # (tb, S, dk)
            # batched contraction over keys; no explicit k.T transpose
            logits = jnp.einsum('bqd,bkd->bqk', qh, kh,
                                preferred_element_type=jnp.float32)
            logits = jnp.where(masked_out, -1e9, logits)
            m = jnp.max(logits, axis=-1, keepdims=True)
            e = jnp.exp(logits - m)
            p = e * pl.reciprocal(jnp.sum(e, axis=-1, keepdims=True),
                                  approx=True)
            # Write each head's context at its lane offset; the output
            # projection then runs as ONE full-K (rows,D)@(D,D) matmul.
            ctx_scr[:, :, sl] = jnp.einsum('bqk,bkd->bqd', p, vh,
                                           preferred_element_type=jnp.float32)

        wo = wo_ref[0]                                   # (D, D) bf16
        attn = jnp.dot(ctx_scr[...].reshape(rows, d).astype(wo.dtype), wo,
                       preferred_element_type=jnp.float32)
        x = x + attn.reshape(tb, s, d)

        # -------- residual 2: pre-LN feed-forward --------
        xn = layer_norm(x, ln_ref[layer, 2], ln_ref[layer, 3])
        w1 = w1_ref[0]
        h1 = jnp.dot(xn.reshape(rows, d).astype(w1.dtype), w1,
                     preferred_element_type=jnp.float32)
        # relu; keep the big (rows, Dff) temp in bf16 (it feeds a bf16 matmul)
        h1 = jnp.maximum(h1 + b1_ref[0], 0.0).astype(jnp.bfloat16)
        w2 = w2_ref[0]
        ff = jnp.dot(h1, w2, preferred_element_type=jnp.float32) + b2_ref[0]
        x = x + ff.reshape(tb, s, d)

        # -------- carry / finalize --------
        @pl.when(layer != num_layers - 1)
        def _():
            o_ref[...] = x.astype(o_ref.dtype)

        @pl.when(layer == num_layers - 1)
        def _():
            o_ref[...] = layer_norm(x, fln_ref[0], fln_ref[1]).astype(o_ref.dtype)

    return kernel


def _device_kind() -> str:
    try:
        return jax.devices()[0].device_kind.lower()
    except Exception:
        return ""


def _vmem_limit_bytes() -> int:
    """~3/4 of physical VMEM: ~96 MiB on v5e/v6e (128 MiB), ~48 MiB on v7x."""
    try:
        phys = int(pltpu.get_tpu_info().vmem_capacity_bytes)
    except Exception:
        phys = 64 * 1024 * 1024        # conservative fallback (v7x-sized)
    return (phys * 3) // 4


def _pick_block_batch(batch: int, seq: int, d_model: int, d_ff: int,
                      vmem_budget: int) -> int:
    """Largest divisor of `batch` that hits the per-generation rows target and
    (roughly) fits the VMEM budget."""
    kind = _device_kind()
    target_rows = 1024 if "v6" in kind else 512     # v6e ridge needs more rows
    tb = max(1, min(batch, max(1, target_rows // max(seq, 1))))
    # v7x: 2 TensorCores/chip -> keep >= 2 batch tiles so the "parallel"
    # batch axis can be sharded across cores.
    if "v7" in kind and batch >= 2:
        tb = min(tb, max(1, batch // 2))

    def fits(t):
        rows = t * seq
        weights = 2 * 2 * (4 * d_model * d_model + 2 * d_model * d_ff)  # bf16, 2 bufs
        acts = 4 * rows * d_model * 5          # x (2 bufs) + out + ctx scratch + slack
        temps = 4 * rows * (3 * d_model + seq) + 2 * rows * d_ff
        return weights + acts + temps <= vmem_budget

    while tb > 1 and not fits(tb):
        tb -= 1
    while batch % tb:
        tb -= 1
    return max(tb, 1)


def encoder_forward(x, mask, params, *, num_heads, eps=1e-6, block_batch=None):
    """x: (B, S, D) float; mask: (B, S) or (B, 1, S) key-padding mask
    (nonzero = keep, 0 = masked), broadcast over query positions & heads."""
    B, S, D = x.shape
    L = params["wq"].shape[0]
    Dff = params["w1"].shape[2]

    x = x.astype(jnp.float32)
    if mask.ndim == 2:
        mask = mask[:, None, :]
    assert mask.shape == (B, 1, S), "mask must be (B, S) or (B, 1, S)"
    mask = mask.astype(jnp.float32)

    vmem_limit = _vmem_limit_bytes()
    tb = block_batch or _pick_block_batch(B, S, D, Dff, vmem_limit)
    assert B % tb == 0, "block_batch must divide batch"
    nb = B // tb

    kernel = _make_kernel(num_heads, D, eps)

    in_specs = [
        pl.BlockSpec((tb, S, D), lambda bt, l: (bt, 0, 0)),      # x
        pl.BlockSpec((tb, 1, S), lambda bt, l: (bt, 0, 0)),      # key-padding mask
        pl.BlockSpec((1, D, D), lambda bt, l: (l, 0, 0)),        # wq
        pl.BlockSpec((1, D, D), lambda bt, l: (l, 0, 0)),        # wk
        pl.BlockSpec((1, D, D), lambda bt, l: (l, 0, 0)),        # wv
        pl.BlockSpec((1, D, D), lambda bt, l: (l, 0, 0)),        # wo
        pl.BlockSpec((1, D, Dff), lambda bt, l: (l, 0, 0)),      # w1
        pl.BlockSpec((1, 1, Dff), lambda bt, l: (l, 0, 0)),      # b1
        pl.BlockSpec((1, Dff, D), lambda bt, l: (l, 0, 0)),      # w2
        pl.BlockSpec((1, 1, D), lambda bt, l: (l, 0, 0)),        # b2
        pl.BlockSpec(memory_space=pltpu.MemorySpace.SMEM),       # ln (L, 4)
        pl.BlockSpec(memory_space=pltpu.MemorySpace.SMEM),       # final ln (2,)
    ]
    out_specs = pl.BlockSpec((tb, S, D), lambda bt, l: (bt, 0, 0))

    return pl.pallas_call(
        kernel,
        out_shape=jax.ShapeDtypeStruct((B, S, D), jnp.float32),
        grid_spec=pltpu.PrefetchScalarGridSpec(
            num_scalar_prefetch=0,
            grid=(nb, L),                      # layer axis innermost (carried)
            in_specs=in_specs,
            out_specs=out_specs,
            scratch_shapes=[pltpu.VMEM((tb, S, D), jnp.float32)],   # head ctx
        ),
        compiler_params=pltpu.CompilerParams(
            dimension_semantics=("parallel", "arbitrary"),
            vmem_limit_bytes=vmem_limit,
        ),
    )(x, mask,
      params["wq"], params["wk"], params["wv"], params["wo"],
      params["w1"], params["b1"], params["w2"], params["b2"],
      params["ln"], params["final_ln"])


def init_params(key, num_layers, d_model, d_ff, num_heads,
                weight_dtype=jnp.bfloat16):
    L = num_layers
    keys = jax.random.split(key, 8)

    def w(k, shape):
        return (0.02 * jax.random.normal(k, shape, jnp.float32)).astype(weight_dtype)

    return {
        # attention projections, stored (in, out)  (== torch weight.T)
        "wq": w(keys[0], (L, d_model, d_model)),
        "wk": w(keys[1], (L, d_model, d_model)),
        "wv": w(keys[2], (L, d_model, d_model)),
        "wo": w(keys[3], (L, d_model, d_model)),
        # feed-forward
        "w1": w(keys[4], (L, d_model, d_ff)),
        "b1": 0.02 * jax.random.normal(keys[5], (L, 1, d_ff), jnp.float32),
        "w2": w(keys[6], (L, d_ff, d_model)),
        "b2": 0.02 * jax.random.normal(keys[7], (L, 1, d_model), jnp.float32),
        # LayerNormalization scalar (alpha, bias) pairs: two per block
        # [a1, b1, a2, b2], plus the final Encoder norm.  torch init: 1 / 0.
        "ln": jnp.tile(jnp.array([1.0, 0.0, 1.0, 0.0], jnp.float32), (L, 1)),
        "final_ln": jnp.array([1.0, 0.0], jnp.float32),
    }


if __name__ == "__main__":
    B, S, d_model, d_ff, num_heads, num_layers = 2, 8, 32, 64, 4, 2

    key = jax.random.PRNGKey(0)
    k_x, k_p = jax.random.split(key, 2)

    x = jax.random.normal(k_x, (B, S, d_model), jnp.float32)
    params = init_params(k_p, num_layers, d_model, d_ff, num_heads)

    # Key-padding source mask (1 = keep, 0 = masked): batch 0 attends to all 8
    # keys, batch 1 has its last 2 keys masked out.
    key_valid = jnp.array([[1.0] * 8, [1.0] * 6 + [0.0] * 2], jnp.float32)  # (B, S)

    out = encoder_forward(x, key_valid, params, num_heads=num_heads)
    jax.block_until_ready(out)

    assert out.shape == (B, S, d_model)
    assert bool(jnp.all(jnp.isfinite(out)))
    print("KERNEL_OK")
</pallas_src>

<mosaic_0001>
module attributes {stable_mosaic.version = 11 : i64} {
  func.func @kernel(%arg0: i32, %arg1: i32, %arg2: memref<2x8x32xf32, #tpu.memory_space<vmem>>, %arg3: memref<2x1x8xf32, #tpu.memory_space<vmem>>, %arg4: memref<1x32x32xbf16, #tpu.memory_space<vmem>>, %arg5: memref<1x32x32xbf16, #tpu.memory_space<vmem>>, %arg6: memref<1x32x32xbf16, #tpu.memory_space<vmem>>, %arg7: memref<1x32x32xbf16, #tpu.memory_space<vmem>>, %arg8: memref<1x32x64xbf16, #tpu.memory_space<vmem>>, %arg9: memref<1x1x64xf32, #tpu.memory_space<vmem>>, %arg10: memref<1x64x32xbf16, #tpu.memory_space<vmem>>, %arg11: memref<1x1x32xf32, #tpu.memory_space<vmem>>, %arg12: memref<2x4xf32, #tpu.memory_space<smem>>, %arg13: memref<2xf32, #tpu.memory_space<smem>>, %arg14: memref<2x8x32xf32, #tpu.memory_space<vmem>>, %arg15: memref<2x8x32xf32, #tpu.memory_space<vmem>>) attributes {dimension_semantics = [#tpu.dimension_semantics<parallel>, #tpu.dimension_semantics<arbitrary>], iteration_bounds = array<i64: 1, 2>, scalar_prefetch = 0 : i64, scratch_operands = 1 : i64, tpu.core_type = #tpu.core_type<tc>, window_params = [{transform_indices = @transform_0, window_bounds = array<i64: 2, 8, 32>}, {transform_indices = @transform_1, window_bounds = array<i64: 2, 1, 8>}, {transform_indices = @transform_2, window_bounds = array<i64: 1, 32, 32>}, {transform_indices = @transform_3, window_bounds = array<i64: 1, 32, 32>}, {transform_indices = @transform_4, window_bounds = array<i64: 1, 32, 32>}, {transform_indices = @transform_5, window_bounds = array<i64: 1, 32, 32>}, {transform_indices = @transform_6, window_bounds = array<i64: 1, 32, 64>}, {transform_indices = @transform_7, window_bounds = array<i64: 1, 1, 64>}, {transform_indices = @transform_8, window_bounds = array<i64: 1, 64, 32>}, {transform_indices = @transform_9, window_bounds = array<i64: 1, 1, 32>}, {transform_indices = @transform_10, window_bounds = array<i64: 2, 4>}, {transform_indices = @transform_11, window_bounds = array<i64: 2>}, {transform_indices = @transform_12, window_bounds = array<i64: 2, 8, 32>}]} {
    %c0_i32 = arith.constant 0 : i32
    %0 = arith.cmpi eq, %arg1, %c0_i32 : i32
    %1 = arith.extui %0 : i1 to i32
    %c0_i32_0 = arith.constant 0 : i32
    %2 = arith.cmpi ne, %1, %c0_i32_0 : i32
    scf.if %2 {
      %c0_84 = arith.constant 0 : index
      %c0_85 = arith.constant 0 : index
      %c0_86 = arith.constant 0 : index
      %188 = vector.load %arg2[%c0_84, %c0_85, %c0_86] : memref<2x8x32xf32, #tpu.memory_space<vmem>>, vector<2x8x32xf32>
      %c0_87 = arith.constant 0 : index
      %c0_88 = arith.constant 0 : index
      %c0_89 = arith.constant 0 : index
      %189 = vector.load %arg14[%c0_87, %c0_88, %c0_89] : memref<2x8x32xf32, #tpu.memory_space<vmem>>, vector<2x8x32xf32>
      tpu.vector_store %arg14[%c0_87, %c0_88, %c0_89], %188 {strides = array<i32>} : memref<2x8x32xf32, #tpu.memory_space<vmem>>, vector<2x8x32xf32>,
    } else {
    }
    %c0 = arith.constant 0 : index
    %c0_1 = arith.constant 0 : index
    %c0_2 = arith.constant 0 : index
    %3 = vector.load %arg14[%c0, %c0_1, %c0_2] : memref<2x8x32xf32, #tpu.memory_space<vmem>>, vector<2x8x32xf32>
    %c0_3 = arith.constant 0 : index
    %c0_4 = arith.constant 0 : index
    %c0_5 = arith.constant 0 : index
    %4 = vector.load %arg3[%c0_3, %c0_4, %c0_5] : memref<2x1x8xf32, #tpu.memory_space<vmem>>, vector<2x1x8xf32>
    %cst = arith.constant 0.000000e+00 : f32
    %5 = vector.broadcast %cst : f32 to vector<2x1x8xf32>
    %6 = arith.cmpf oeq, %4, %5 : vector<2x1x8xf32>
    %7 = arith.index_cast %arg1 : i32 to index
    %c0_6 = arith.constant 0 : index
    %8 = memref.load %arg12[%7, %c0_6] : memref<2x4xf32, #tpu.memory_space<smem>>
    %9 = arith.index_cast %arg1 : i32 to index
    %c1 = arith.constant 1 : index
    %10 = memref.load %arg12[%9, %c1] : memref<2x4xf32, #tpu.memory_space<smem>>
    %cst_7 = arith.constant dense<0.000000e+00> : vector<2x8xf32>
    %11 = vector.multi_reduction <add>, %3, %cst_7 [2] : vector<2x8x32xf32> to vector<2x8xf32>
    %12 = vector.shape_cast %11 : vector<2x8xf32> to vector<2x8x1xf32>
    %cst_8 = arith.constant 3.200000e+01 : f32
    %13 = vector.broadcast %cst_8 : f32 to vector<2x8x1xf32>
    %14 = arith.divf %12, %13 : vector<2x8x1xf32>
    %15 = vector.broadcast %14 : vector<2x8x1xf32> to vector<2x8x32xf32>
    %16 = arith.subf %3, %15 : vector<2x8x32xf32>
    %17 = arith.mulf %16, %16 : vector<2x8x32xf32>
    %cst_9 = arith.constant dense<0.000000e+00> : vector<2x8xf32>
    %18 = vector.multi_reduction <add>, %17, %cst_9 [2] : vector<2x8x32xf32> to vector<2x8xf32>
    %19 = vector.shape_cast %18 : vector<2x8xf32> to vector<2x8x1xf32>
    %cst_10 = arith.constant 0.0322580636 : f32
    %20 = vector.broadcast %cst_10 : f32 to vector<2x8x1xf32>
    %21 = arith.mulf %19, %20 : vector<2x8x1xf32>
    %22 = math.sqrt %21 : vector<2x8x1xf32>
    %cst_11 = arith.constant 9.99999997E-7 : f32
    %23 = vector.broadcast %cst_11 : f32 to vector<2x8x1xf32>
    %24 = arith.addf %22, %23 : vector<2x8x1xf32>
    %25 = vector.broadcast %24 : vector<2x8x1xf32> to vector<2x8x32xf32>
    %26 = arith.divf %16, %25 : vector<2x8x32xf32>
    %27 = vector.broadcast %8 : f32 to vector<2x8x32xf32>
    %28 = arith.mulf %27, %26 : vector<2x8x32xf32>
    %29 = vector.broadcast %10 : f32 to vector<2x8x32xf32>
    %30 = arith.addf %28, %29 : vector<2x8x32xf32>
    %31 = vector.shape_cast %30 : vector<2x8x32xf32> to vector<16x32xf32>
    %c0_12 = arith.constant 0 : index
    %c0_13 = arith.constant 0 : index
    %c0_14 = arith.constant 0 : index
    %32 = vector.load %arg4[%c0_12, %c0_13, %c0_14] : memref<1x32x32xbf16, #tpu.memory_space<vmem>>, vector<1x32x32xbf16>
    %33 = vector.shape_cast %32 : vector<1x32x32xbf16> to vector<32x32xbf16>
    %34 = arith.truncf %31 : vector<16x32xf32> to vector<16x32xbf16>
    %cst_15 = arith.constant dense<0.000000e+00> : vector<16x32xf32>
    %35 = tpu.matmul %34, %33, %cst_15 {dimension_numbers = #tpu.dot_dimension_numbers<[1], [0], [0], [1], [0, 0, 1, 1], [], []>} : vector<16x32xbf16>, vector<32x32xbf16>, vector<16x32xf32> -> vector<16x32xf32>
    %cst_16 = arith.constant 0.353553385 : f32
    %36 = vector.broadcast %cst_16 : f32 to vector<16x32xf32>
    %37 = arith.mulf %35, %36 : vector<16x32xf32>
    %38 = vector.shape_cast %37 : vector<16x32xf32> to vector<2x8x32xf32>
    %c0_17 = arith.constant 0 : index
    %c0_18 = arith.constant 0 : index
    %c0_19 = arith.constant 0 : index
    %39 = vector.load %arg5[%c0_17, %c0_18, %c0_19] : memref<1x32x32xbf16, #tpu.memory_space<vmem>>, vector<1x32x32xbf16>
    %40 = vector.shape_cast %39 : vector<1x32x32xbf16> to vector<32x32xbf16>
    %41 = arith.truncf %31 : vector<16x32xf32> to vector<16x32xbf16>
    %cst_20 = arith.constant dense<0.000000e+00> : vector<16x32xf32>
    %42 = tpu.matmul %41, %40, %cst_20 {dimension_numbers = #tpu.dot_dimension_numbers<[1], [0], [0], [1], [0, 0, 1, 1], [], []>} : vector<16x32xbf16>, vector<32x32xbf16>, vector<16x32xf32> -> vector<16x32xf32>
    %43 = vector.shape_cast %42 : vector<16x32xf32> to vector<2x8x32xf32>
    %c0_21 = arith.constant 0 : index
    %c0_22 = arith.constant 0 : index
    %c0_23 = arith.constant 0 : index
    %44 = vector.load %arg6[%c0_21, %c0_22, %c0_23] : memref<1x32x32xbf16, #tpu.memory_space<vmem>>, vector<1x32x32xbf16>
    %45 = vector.shape_cast %44 : vector<1x32x32xbf16> to vector<32x32xbf16>
    %46 = arith.truncf %31 : vector<16x32xf32> to vector<16x32xbf16>
    %cst_24 = arith.constant dense<0.000000e+00> : vector<16x32xf32>
    %47 = tpu.matmul %46, %45, %cst_24 {dimension_numbers = #tpu.dot_dimension_numbers<[1], [0], [0], [1], [0, 0, 1, 1], [], []>} : vector<16x32xbf16>, vector<32x32xbf16>, vector<16x32xf32> -> vector<16x32xf32>
    %48 = vector.shape_cast %47 : vector<16x32xf32> to vector<2x8x32xf32>
    %49 = vector.extract_strided_slice %38 {offsets = [0, 0, 0], sizes = [2, 8, 8], strides = [1, 1, 1]} : vector<2x8x32xf32> to vector<2x8x8xf32>
    %50 = vector.extract_strided_slice %43 {offsets = [0, 0, 0], sizes = [2, 8, 8], strides = [1, 1, 1]} : vector<2x8x32xf32> to vector<2x8x8xf32>
    %51 = vector.extract_strided_slice %48 {offsets = [0, 0, 0], sizes = [2, 8, 8], strides = [1, 1, 1]} : vector<2x8x32xf32> to vector<2x8x8xf32>
    "tpu.trace_start"() <{level = 10 : i32, message = "bqd,bkd->bqk"}> : () -> ()
    %cst_25 = arith.constant dense<0.000000e+00> : vector<2x8x8xf32>
    %52 = tpu.matmul %49, %50, %cst_25 {dimension_numbers = #tpu.dot_dimension_numbers<[2], [2], [1], [1], [0, 0, 0, 1, 1, 1], [0], [0]>} : vector<2x8x8xf32>, vector<2x8x8xf32>, vector<2x8x8xf32> -> vector<2x8x8xf32>
    %cst_26 = arith.constant -1.000000e+09 : f32
    "tpu.trace_stop"() : () -> ()
    %53 = vector.shape_cast %6 : vector<2x1x8xi1> to vector<2x1x8xi1>
    %54 = vector.broadcast %53 : vector<2x1x8xi1> to vector<2x8x8xi1>
    %55 = vector.broadcast %cst_26 : f32 to vector<2x8x8xf32>
    %56 = arith.select %54, %55, %52 : vector<2x8x8xi1>, vector<2x8x8xf32>
    %cst_27 = arith.constant dense<0xFF800000> : vector<2x8xf32>
    %57 = vector.multi_reduction <maximumf>, %56, %cst_27 [2] : vector<2x8x8xf32> to vector<2x8xf32>
    %58 = vector.shape_cast %57 : vector<2x8xf32> to vector<2x8x1xf32>
    %59 = vector.broadcast %58 : vector<2x8x1xf32> to vector<2x8x8xf32>
    %60 = arith.subf %56, %59 : vector<2x8x8xf32>
    %61 = math.exp %60 : vector<2x8x8xf32>
    %cst_28 = arith.constant dense<0.000000e+00> : vector<2x8xf32>
    %62 = vector.multi_reduction <add>, %61, %cst_28 [2] : vector<2x8x8xf32> to vector<2x8xf32>
    %63 = vector.shape_cast %62 : vector<2x8xf32> to vector<2x8x1xf32>
    %64 = tpu.reciprocal %63 {approx = true} : vector<2x8x1xf32> -> vector<2x8x1xf32>
    %65 = vector.broadcast %64 : vector<2x8x1xf32> to vector<2x8x8xf32>
    %66 = arith.mulf %61, %65 : vector<2x8x8xf32>
    "tpu.trace_start"() <{level = 10 : i32, message = "bqk,bkd->bqd"}> : () -> ()
    %cst_29 = arith.constant dense<0.000000e+00> : vector<2x8x8xf32>
    %67 = tpu.matmul %66, %51, %cst_29 {dimension_numbers = #tpu.dot_dimension_numbers<[2], [1], [1], [2], [0, 0, 0, 1, 1, 2], [0], [0]>} : vector<2x8x8xf32>, vector<2x8x8xf32>, vector<2x8x8xf32> -> vector<2x8x8xf32>
    "tpu.trace_stop"() : () -> ()
    %c0_30 = arith.constant 0 : index
    %c0_31 = arith.constant 0 : index
    %c0_32 = arith.constant 0 : index
    %68 = vector.load %arg15[%c0_30, %c0_31, %c0_32] : memref<2x8x32xf32, #tpu.memory_space<vmem>>, vector<2x8x8xf32>
    tpu.vector_store %arg15[%c0_30, %c0_31, %c0_32], %67 {strides = array<i32>} : memref<2x8x32xf32, #tpu.memory_space<vmem>>, vector<2x8x8xf32>,
    %69 = vector.extract_strided_slice %38 {offsets = [0, 0, 8], sizes = [2, 8, 8], strides = [1, 1, 1]} : vector<2x8x32xf32> to vector<2x8x8xf32>
    %70 = vector.extract_strided_slice %43 {offsets = [0, 0, 8], sizes = [2, 8, 8], strides = [1, 1, 1]} : vector<2x8x32xf32> to vector<2x8x8xf32>
    %71 = vector.extract_strided_slice %48 {offsets = [0, 0, 8], sizes = [2, 8, 8], strides = [1, 1, 1]} : vector<2x8x32xf32> to vector<2x8x8xf32>
    "tpu.trace_start"() <{level = 10 : i32, message = "bqd,bkd->bqk"}> : () -> ()
    %cst_33 = arith.constant dense<0.000000e+00> : vector<2x8x8xf32>
    %72 = tpu.matmul %69, %70, %cst_33 {dimension_numbers = #tpu.dot_dimension_numbers<[2], [2], [1], [1], [0, 0, 0, 1, 1, 1], [0], [0]>} : vector<2x8x8xf32>, vector<2x8x8xf32>, vector<2x8x8xf32> -> vector<2x8x8xf32>
    %cst_34 = arith.constant -1.000000e+09 : f32
    "tpu.trace_stop"() : () -> ()
    %73 = vector.shape_cast %6 : vector<2x1x8xi1> to vector<2x1x8xi1>
    %74 = vector.broadcast %73 : vector<2x1x8xi1> to vector<2x8x8xi1>
    %75 = vector.broadcast %cst_34 : f32 to vector<2x8x8xf32>
    %76 = arith.select %74, %75, %72 : vector<2x8x8xi1>, vector<2x8x8xf32>
    %cst_35 = arith.constant dense<0xFF800000> : vector<2x8xf32>
    %77 = vector.multi_reduction <maximumf>, %76, %cst_35 [2] : vector<2x8x8xf32> to vector<2x8xf32>
    %78 = vector.shape_cast %77 : vector<2x8xf32> to vector<2x8x1xf32>
    %79 = vector.broadcast %78 : vector<2x8x1xf32> to vector<2x8x8xf32>
    %80 = arith.subf %76, %79 : vector<2x8x8xf32>
    %81 = math.exp %80 : vector<2x8x8xf32>
    %cst_36 = arith.constant dense<0.000000e+00> : vector<2x8xf32>
    %82 = vector.multi_reduction <add>, %81, %cst_36 [2] : vector<2x8x8xf32> to vector<2x8xf32>
    %83 = vector.shape_cast %82 : vector<2x8xf32> to vector<2x8x1xf32>
    %84 = tpu.reciprocal %83 {approx = true} : vector<2x8x1xf32> -> vector<2x8x1xf32>
    %85 = vector.broadcast %84 : vector<2x8x1xf32> to vector<2x8x8xf32>
    %86 = arith.mulf %81, %85 : vector<2x8x8xf32>
    "tpu.trace_start"() <{level = 10 : i32, message = "bqk,bkd->bqd"}> : () -> ()
    %cst_37 = arith.constant dense<0.000000e+00> : vector<2x8x8xf32>
    %87 = tpu.matmul %86, %71, %cst_37 {dimension_numbers = #tpu.dot_dimension_numbers<[2], [1], [1], [2], [0, 0, 0, 1, 1, 2], [0], [0]>} : vector<2x8x8xf32>, vector<2x8x8xf32>, vector<2x8x8xf32> -> vector<2x8x8xf32>
    "tpu.trace_stop"() : () -> ()
    %c0_38 = arith.constant 0 : index
    %c0_39 = arith.constant 0 : index
    %c8 = arith.constant 8 : index
    %88 = vector.load %arg15[%c0_38, %c0_39, %c8] : memref<2x8x32xf32, #tpu.memory_space<vmem>>, vector<2x8x8xf32>
    tpu.vector_store %arg15[%c0_38, %c0_39, %c8], %87 {strides = array<i32>} : memref<2x8x32xf32, #tpu.memory_space<vmem>>, vector<2x8x8xf32>,
    %89 = vector.extract_strided_slice %38 {offsets = [0, 0, 16], sizes = [2, 8, 8], strides = [1, 1, 1]} : vector<2x8x32xf32> to vector<2x8x8xf32>
    %90 = vector.extract_strided_slice %43 {offsets = [0, 0, 16], sizes = [2, 8, 8], strides = [1, 1, 1]} : vector<2x8x32xf32> to vector<2x8x8xf32>
    %91 = vector.extract_strided_slice %48 {offsets = [0, 0, 16], sizes = [2, 8, 8], strides = [1, 1, 1]} : vector<2x8x32xf32> to vector<2x8x8xf32>
    "tpu.trace_start"() <{level = 10 : i32, message = "bqd,bkd->bqk"}> : () -> ()
    %cst_40 = arith.constant dense<0.000000e+00> : vector<2x8x8xf32>
    %92 = tpu.matmul %89, %90, %cst_40 {dimension_numbers = #tpu.dot_dimension_numbers<[2], [2], [1], [1], [0, 0, 0, 1, 1, 1], [0], [0]>} : vector<2x8x8xf32>, vector<2x8x8xf32>, vector<2x8x8xf32> -> vector<2x8x8xf32>
    %cst_41 = arith.constant -1.000000e+09 : f32
    "tpu.trace_stop"() : () -> ()
    %93 = vector.shape_cast %6 : vector<2x1x8xi1> to vector<2x1x8xi1>
    %94 = vector.broadcast %93 : vector<2x1x8xi1> to vector<2x8x8xi1>
    %95 = vector.broadcast %cst_41 : f32 to vector<2x8x8xf32>
    %96 = arith.select %94, %95, %92 : vector<2x8x8xi1>, vector<2x8x8xf32>
    %cst_42 = arith.constant dense<0xFF800000> : vector<2x8xf32>
    %97 = vector.multi_reduction <maximumf>, %96, %cst_42 [2] : vector<2x8x8xf32> to vector<2x8xf32>
    %98 = vector.shape_cast %97 : vector<2x8xf32> to vector<2x8x1xf32>
    %99 = vector.broadcast %98 : vector<2x8x1xf32> to vector<2x8x8xf32>
    %100 = arith.subf %96, %99 : vector<2x8x8xf32>
    %101 = math.exp %100 : vector<2x8x8xf32>
    %cst_43 = arith.constant dense<0.000000e+00> : vector<2x8xf32>
    %102 = vector.multi_reduction <add>, %101, %cst_43 [2] : vector<2x8x8xf32> to vector<2x8xf32>
    %103 = vector.shape_cast %102 : vector<2x8xf32> to vector<2x8x1xf32>
    %104 = tpu.reciprocal %103 {approx = true} : vector<2x8x1xf32> -> vector<2x8x1xf32>
    %105 = vector.broadcast %104 : vector<2x8x1xf32> to vector<2x8x8xf32>
    %106 = arith.mulf %101, %105 : vector<2x8x8xf32>
    "tpu.trace_start"() <{level = 10 : i32, message = "bqk,bkd->bqd"}> : () -> ()
    %cst_44 = arith.constant dense<0.000000e+00> : vector<2x8x8xf32>
    %107 = tpu.matmul %106, %91, %cst_44 {dimension_numbers = #tpu.dot_dimension_numbers<[2], [1], [1], [2], [0, 0, 0, 1, 1, 2], [0], [0]>} : vector<2x8x8xf32>, vector<2x8x8xf32>, vector<2x8x8xf32> -> vector<2x8x8xf32>
    "tpu.trace_stop"() : () -> ()
    %c0_45 = arith.constant 0 : index
    %c0_46 = arith.constant 0 : index
    %c16 = arith.constant 16 : index
    %108 = vector.load %arg15[%c0_45, %c0_46, %c16] : memref<2x8x32xf32, #tpu.memory_space<vmem>>, vector<2x8x8xf32>
    tpu.vector_store %arg15[%c0_45, %c0_46, %c16], %107 {strides = array<i32>} : memref<2x8x32xf32, #tpu.memory_space<vmem>>, vector<2x8x8xf32>,
    %109 = vector.extract_strided_slice %38 {offsets = [0, 0, 24], sizes = [2, 8, 8], strides = [1, 1, 1]} : vector<2x8x32xf32> to vector<2x8x8xf32>
    %110 = vector.extract_strided_slice %43 {offsets = [0, 0, 24], sizes = [2, 8, 8], strides = [1, 1, 1]} : vector<2x8x32xf32> to vector<2x8x8xf32>
    %111 = vector.extract_strided_slice %48 {offsets = [0, 0, 24], sizes = [2, 8, 8], strides = [1, 1, 1]} : vector<2x8x32xf32> to vector<2x8x8xf32>
    "tpu.trace_start"() <{level = 10 : i32, message = "bqd,bkd->bqk"}> : () -> ()
    %cst_47 = arith.constant dense<0.000000e+00> : vector<2x8x8xf32>
    %112 = tpu.matmul %109, %110, %cst_47 {dimension_numbers = #tpu.dot_dimension_numbers<[2], [2], [1], [1], [0, 0, 0, 1, 1, 1], [0], [0]>} : vector<2x8x8xf32>, vector<2x8x8xf32>, vector<2x8x8xf32> -> vector<2x8x8xf32>
    %cst_48 = arith.constant -1.000000e+09 : f32
    "tpu.trace_stop"() : () -> ()
    %113 = vector.shape_cast %6 : vector<2x1x8xi1> to vector<2x1x8xi1>
    %114 = vector.broadcast %113 : vector<2x1x8xi1> to vector<2x8x8xi1>
    %115 = vector.broadcast %cst_48 : f32 to vector<2x8x8xf32>
    %116 = arith.select %114, %115, %112 : vector<2x8x8xi1>, vector<2x8x8xf32>
    %cst_49 = arith.constant dense<0xFF800000> : vector<2x8xf32>
    %117 = vector.multi_reduction <maximumf>, %116, %cst_49 [2] : vector<2x8x8xf32> to vector<2x8xf32>
    %118 = vector.shape_cast %117 : vector<2x8xf32> to vector<2x8x1xf32>
    %119 = vector.broadcast %118 : vector<2x8x1xf32> to vector<2x8x8xf32>
    %120 = arith.subf %116, %119 : vector<2x8x8xf32>
    %121 = math.exp %120 : vector<2x8x8xf32>
    %cst_50 = arith.constant dense<0.000000e+00> : vector<2x8xf32>
    %122 = vector.multi_reduction <add>, %121, %cst_50 [2] : vector<2x8x8xf32> to vector<2x8xf32>
    %123 = vector.shape_cast %122 : vector<2x8xf32> to vector<2x8x1xf32>
    %124 = tpu.reciprocal %123 {approx = true} : vector<2x8x1xf32> -> vector<2x8x1xf32>
    %125 = vector.broadcast %124 : vector<2x8x1xf32> to vector<2x8x8xf32>
    %126 = arith.mulf %121, %125 : vector<2x8x8xf32>
    "tpu.trace_start"() <{level = 10 : i32, message = "bqk,bkd->bqd"}> : () -> ()
    %cst_51 = arith.constant dense<0.000000e+00> : vector<2x8x8xf32>
    %127 = tpu.matmul %126, %111, %cst_51 {dimension_numbers = #tpu.dot_dimension_numbers<[2], [1], [1], [2], [0, 0, 0, 1, 1, 2], [0], [0]>} : vector<2x8x8xf32>, vector<2x8x8xf32>, vector<2x8x8xf32> -> vector<2x8x8xf32>
    "tpu.trace_stop"() : () -> ()
    %c0_52 = arith.constant 0 : index
    %c0_53 = arith.constant 0 : index
    %c24 = arith.constant 24 : index
    %128 = vector.load %arg15[%c0_52, %c0_53, %c24] : memref<2x8x32xf32, #tpu.memory_space<vmem>>, vector<2x8x8xf32>
    tpu.vector_store %arg15[%c0_52, %c0_53, %c24], %127 {strides = array<i32>} : memref<2x8x32xf32, #tpu.memory_space<vmem>>, vector<2x8x8xf32>,
    %c0_54 = arith.constant 0 : index
    %c0_55 = arith.constant 0 : index
    %c0_56 = arith.constant 0 : index
    %129 = vector.load %arg7[%c0_54, %c0_55, %c0_56] : memref<1x32x32xbf16, #tpu.memory_space<vmem>>, vector<1x32x32xbf16>
    %130 = vector.shape_cast %129 : vector<1x32x32xbf16> to vector<32x32xbf16>
    %c0_57 = arith.constant 0 : index
    %c0_58 = arith.constant 0 : index
    %c0_59 = arith.constant 0 : index
    %131 = vector.load %arg15[%c0_57, %c0_58, %c0_59] : memref<2x8x32xf32, #tpu.memory_space<vmem>>, vector<2x8x32xf32>
    %132 = vector.shape_cast %131 : vector<2x8x32xf32> to vector<16x32xf32>
    %133 = arith.truncf %132 : vector<16x32xf32> to vector<16x32xbf16>
    %cst_60 = arith.constant dense<0.000000e+00> : vector<16x32xf32>
    %134 = tpu.matmul %133, %130, %cst_60 {dimension_numbers = #tpu.dot_dimension_numbers<[1], [0], [0], [1], [0, 0, 1, 1], [], []>} : vector<16x32xbf16>, vector<32x32xbf16>, vector<16x32xf32> -> vector<16x32xf32>
    %135 = vector.shape_cast %134 : vector<16x32xf32> to vector<2x8x32xf32>
    %136 = arith.addf %3, %135 : vector<2x8x32xf32>
    %137 = arith.index_cast %arg1 : i32 to index
    %c2 = arith.constant 2 : index
    %138 = memref.load %arg12[%137, %c2] : memref<2x4xf32, #tpu.memory_space<smem>>
    %139 = arith.index_cast %arg1 : i32 to index
    %c3 = arith.constant 3 : index
    %140 = memref.load %arg12[%139, %c3] : memref<2x4xf32, #tpu.memory_space<smem>>
    %cst_61 = arith.constant dense<0.000000e+00> : vector<2x8xf32>
    %141 = vector.multi_reduction <add>, %136, %cst_61 [2] : vector<2x8x32xf32> to vector<2x8xf32>
    %142 = vector.shape_cast %141 : vector<2x8xf32> to vector<2x8x1xf32>
    %cst_62 = arith.constant 3.200000e+01 : f32
    %143 = vector.broadcast %cst_62 : f32 to vector<2x8x1xf32>
    %144 = arith.divf %142, %143 : vector<2x8x1xf32>
    %145 = vector.broadcast %144 : vector<2x8x1xf32> to vector<2x8x32xf32>
    %146 = arith.subf %136, %145 : vector<2x8x32xf32>
    %147 = arith.mulf %146, %146 : vector<2x8x32xf32>
    %cst_63 = arith.constant dense<0.000000e+00> : vector<2x8xf32>
    %148 = vector.multi_reduction <add>, %147, %cst_63 [2] : vector<2x8x32xf32> to vector<2x8xf32>
    %149 = vector.shape_cast %148 : vector<2x8xf32> to vector<2x8x1xf32>
    %cst_64 = arith.constant 0.0322580636 : f32
    %150 = vector.broadcast %cst_64 : f32 to vector<2x8x1xf32>
    %151 = arith.mulf %149, %150 : vector<2x8x1xf32>
    %152 = math.sqrt %151 : vector<2x8x1xf32>
    %cst_65 = arith.constant 9.99999997E-7 : f32
    %153 = vector.broadcast %cst_65 : f32 to vector<2x8x1xf32>
    %154 = arith.addf %152, %153 : vector<2x8x1xf32>
    %155 = vector.broadcast %154 : vector<2x8x1xf32> to vector<2x8x32xf32>
    %156 = arith.divf %146, %155 : vector<2x8x32xf32>
    %157 = vector.broadcast %138 : f32 to vector<2x8x32xf32>
    %158 = arith.mulf %157, %156 : vector<2x8x32xf32>
    %159 = vector.broadcast %140 : f32 to vector<2x8x32xf32>
    %160 = arith.addf %158, %159 : vector<2x8x32xf32>
    %c0_66 = arith.constant 0 : index
    %c0_67 = arith.constant 0 : index
    %c0_68 = arith.constant 0 : index
    %161 = vector.load %arg8[%c0_66, %c0_67, %c0_68] : memref<1x32x64xbf16, #tpu.memory_space<vmem>>, vector<1x32x64xbf16>
    %162 = vector.shape_cast %161 : vector<1x32x64xbf16> to vector<32x64xbf16>
    %163 = vector.shape_cast %160 : vector<2x8x32xf32> to vector<16x32xf32>
    %164 = arith.truncf %163 : vector<16x32xf32> to vector<16x32xbf16>
    %cst_69 = arith.constant dense<0.000000e+00> : vector<16x64xf32>
    %165 = tpu.matmul %164, %162, %cst_69 {dimension_numbers = #tpu.dot_dimension_numbers<[1], [0], [0], [1], [0, 0, 1, 1], [], []>} : vector<16x32xbf16>, vector<32x64xbf16>, vector<16x64xf32> -> vector<16x64xf32>
    %c0_70 = arith.constant 0 : index
    %c0_71 = arith.constant 0 : index
    %c0_72 = arith.constant 0 : index
    %166 = vector.load %arg9[%c0_70, %c0_71, %c0_72] : memref<1x1x64xf32, #tpu.memory_space<vmem>>, vector<1x1x64xf32>
    %167 = vector.shape_cast %166 : vector<1x1x64xf32> to vector<1x64xf32>
    %168 = vector.broadcast %167 : vector<1x64xf32> to vector<16x64xf32>
    %169 = arith.addf %165, %168 : vector<16x64xf32>
    %cst_73 = arith.constant 0.000000e+00 : f32
    %170 = vector.broadcast %cst_73 : f32 to vector<16x64xf32>
    %171 = arith.maximumf %169, %170 : vector<16x64xf32>
    %172 = arith.truncf %171 : vector<16x64xf32> to vector<16x64xbf16>
    %c0_74 = arith.constant 0 : index
    %c0_75 = arith.constant 0 : index
    %c0_76 = arith.constant 0 : index
    %173 = vector.load %arg10[%c0_74, %c0_75, %c0_76] : memref<1x64x32xbf16, #tpu.memory_space<vmem>>, vector<1x64x32xbf16>
    %174 = vector.shape_cast %173 : vector<1x64x32xbf16> to vector<64x32xbf16>
    %cst_77 = arith.constant dense<0.000000e+00> : vector<16x32xf32>
    %175 = tpu.matmul %172, %174, %cst_77 {dimension_numbers = #tpu.dot_dimension_numbers<[1], [0], [0], [1], [0, 0, 1, 1], [], []>} : vector<16x64xbf16>, vector<64x32xbf16>, vector<16x32xf32> -> vector<16x32xf32>
    %c0_78 = arith.constant 0 : index
    %c0_79 = arith.constant 0 : index
    %c0_80 = arith.constant 0 : index
    %176 = vector.load %arg11[%c0_78, %c0_79, %c0_80] : memref<1x1x32xf32, #tpu.memory_space<vmem>>, vector<1x1x32xf32>
    %177 = vector.shape_cast %176 : vector<1x1x32xf32> to vector<1x32xf32>
    %178 = vector.broadcast %177 : vector<1x32xf32> to vector<16x32xf32>
    %179 = arith.addf %175, %178 : vector<16x32xf32>
    %180 = vector.shape_cast %179 : vector<16x32xf32> to vector<2x8x32xf32>
    %181 = arith.addf %136, %180 : vector<2x8x32xf32>
    %c1_i32 = arith.constant 1 : i32
    %182 = arith.cmpi ne, %arg1, %c1_i32 : i32
    %183 = arith.extui %182 : i1 to i32
    %c0_i32_81 = arith.constant 0 : i32
    %184 = arith.cmpi ne, %183, %c0_i32_81 : i32
    scf.if %184 {
      %c0_84 = arith.constant 0 : index
      %c0_85 = arith.constant 0 : index
      %c0_86 = arith.constant 0 : index
      %188 = vector.load %arg14[%c0_84, %c0_85, %c0_86] : memref<2x8x32xf32, #tpu.memory_space<vmem>>, vector<2x8x32xf32>
      tpu.vector_store %arg14[%c0_84, %c0_85, %c0_86], %181 {strides = array<i32>} : memref<2x8x32xf32, #tpu.memory_space<vmem>>, vector<2x8x32xf32>,
    } else {
    }
    %c1_i32_82 = arith.constant 1 : i32
    %185 = arith.cmpi eq, %arg1, %c1_i32_82 : i32
    %186 = arith.extui %185 : i1 to i32
    %c0_i32_83 = arith.constant 0 : i32
    %187 = arith.cmpi ne, %186, %c0_i32_83 : i32
    scf.if %187 {
      %c0_84 = arith.constant 0 : index
      %188 = memref.load %arg13[%c0_84] : memref<2xf32, #tpu.memory_space<smem>>
      %c1_85 = arith.constant 1 : index
      %189 = memref.load %arg13[%c1_85] : memref<2xf32, #tpu.memory_space<smem>>
      %cst_86 = arith.constant dense<0.000000e+00> : vector<2x8xf32>
      %190 = vector.multi_reduction <add>, %181, %cst_86 [2] : vector<2x8x32xf32> to vector<2x8xf32>
      %191 = vector.shape_cast %190 : vector<2x8xf32> to vector<2x8x1xf32>
      %cst_87 = arith.constant 3.200000e+01 : f32
      %192 = vector.broadcast %cst_87 : f32 to vector<2x8x1xf32>
      %193 = arith.divf %191, %192 : vector<2x8x1xf32>
      %194 = vector.broadcast %193 : vector<2x8x1xf32> to vector<2x8x32xf32>
      %195 = arith.subf %181, %194 : vector<2x8x32xf32>
      %196 = arith.mulf %195, %195 : vector<2x8x32xf32>
      %cst_88 = arith.constant dense<0.000000e+00> : vector<2x8xf32>
      %197 = vector.multi_reduction <add>, %196, %cst_88 [2] : vector<2x8x32xf32> to vector<2x8xf32>
      %198 = vector.shape_cast %197 : vector<2x8xf32> to vector<2x8x1xf32>
      %cst_89 = arith.constant 0.0322580636 : f32
      %199 = vector.broadcast %cst_89 : f32 to vector<2x8x1xf32>
      %200 = arith.mulf %198, %199 : vector<2x8x1xf32>
      %201 = math.sqrt %200 : vector<2x8x1xf32>
      %cst_90 = arith.constant 9.99999997E-7 : f32
      %202 = vector.broadcast %cst_90 : f32 to vector<2x8x1xf32>
      %203 = arith.addf %201, %202 : vector<2x8x1xf32>
      %204 = vector.broadcast %203 : vector<2x8x1xf32> to vector<2x8x32xf32>
      %205 = arith.divf %195, %204 : vector<2x8x32xf32>
      %206 = vector.broadcast %188 : f32 to vector<2x8x32xf32>
      %207 = arith.mulf %206, %205 : vector<2x8x32xf32>
      %208 = vector.broadcast %189 : f32 to vector<2x8x32xf32>
      %209 = arith.addf %207, %208 : vector<2x8x32xf32>
      %c0_91 = arith.constant 0 : index
      %c0_92 = arith.constant 0 : index
      %c0_93 = arith.constant 0 : index
      %210 = vector.load %arg14[%c0_91, %c0_92, %c0_93] : memref<2x8x32xf32, #tpu.memory_space<vmem>>, vector<2x8x32xf32>
      tpu.vector_store %arg14[%c0_91, %c0_92, %c0_93], %209 {strides = array<i32>} : memref<2x8x32xf32, #tpu.memory_space<vmem>>, vector<2x8x32xf32>,
    } else {
    }
    return
  }
  func.func @transform_0(%arg0: i32, %arg1: i32) -> (i32, i32, i32) {
    %c0_i32 = arith.constant 0 : i32
    %c0_i32_0 = arith.constant 0 : i32
    %c0_i32_1 = arith.constant 0 : i32
    return %arg0, %c0_i32, %c0_i32_0 : i32, i32, i32
  }
  func.func @transform_1(%arg0: i32, %arg1: i32) -> (i32, i32, i32) {
    %c0_i32 = arith.constant 0 : i32
    %c0_i32_0 = arith.constant 0 : i32
    %c0_i32_1 = arith.constant 0 : i32
    return %arg0, %c0_i32, %c0_i32_0 : i32, i32, i32
  }
  func.func @transform_2(%arg0: i32, %arg1: i32) -> (i32, i32, i32) {
    %c0_i32 = arith.constant 0 : i32
    %c0_i32_0 = arith.constant 0 : i32
    %c0_i32_1 = arith.constant 0 : i32
    return %arg1, %c0_i32, %c0_i32_0 : i32, i32, i32
  }
  func.func @transform_3(%arg0: i32, %arg1: i32) -> (i32, i32, i32) {
    %c0_i32 = arith.constant 0 : i32
    %c0_i32_0 = arith.constant 0 : i32
    %c0_i32_1 = arith.constant 0 : i32
    return %arg1, %c0_i32, %c0_i32_0 : i32, i32, i32
  }
  func.func @transform_4(%arg0: i32, %arg1: i32) -> (i32, i32, i32) {
    %c0_i32 = arith.constant 0 : i32
    %c0_i32_0 = arith.constant 0 : i32
    %c0_i32_1 = arith.constant 0 : i32
    return %arg1, %c0_i32, %c0_i32_0 : i32, i32, i32
  }
  func.func @transform_5(%arg0: i32, %arg1: i32) -> (i32, i32, i32) {
    %c0_i32 = arith.constant 0 : i32
    %c0_i32_0 = arith.constant 0 : i32
    %c0_i32_1 = arith.constant 0 : i32
    return %arg1, %c0_i32, %c0_i32_0 : i32, i32, i32
  }
  func.func @transform_6(%arg0: i32, %arg1: i32) -> (i32, i32, i32) {
    %c0_i32 = arith.constant 0 : i32
    %c0_i32_0 = arith.constant 0 : i32
    %c0_i32_1 = arith.constant 0 : i32
    return %arg1, %c0_i32, %c0_i32_0 : i32, i32, i32
  }
  func.func @transform_7(%arg0: i32, %arg1: i32) -> (i32, i32, i32) {
    %c0_i32 = arith.constant 0 : i32
    %c0_i32_0 = arith.constant 0 : i32
    %c0_i32_1 = arith.constant 0 : i32
    return %arg1, %c0_i32, %c0_i32_0 : i32, i32, i32
  }
  func.func @transform_8(%arg0: i32, %arg1: i32) -> (i32, i32, i32) {
    %c0_i32 = arith.constant 0 : i32
    %c0_i32_0 = arith.constant 0 : i32
    %c0_i32_1 = arith.constant 0 : i32
    return %arg1, %c0_i32, %c0_i32_0 : i32, i32, i32
  }
  func.func @transform_9(%arg0: i32, %arg1: i32) -> (i32, i32, i32) {
    %c0_i32 = arith.constant 0 : i32
    %c0_i32_0 = arith.constant 0 : i32
    %c0_i32_1 = arith.constant 0 : i32
    return %arg1, %c0_i32, %c0_i32_0 : i32, i32, i32
  }
  func.func @transform_10(%arg0: i32, %arg1: i32) -> (i32, i32) {
    %c0_i32 = arith.constant 0 : i32
    %c0_i32_0 = arith.constant 0 : i32
    %c0_i32_1 = arith.constant 0 : i32
    return %c0_i32, %c0_i32_0 : i32, i32
  }
  func.func @transform_11(%arg0: i32, %arg1: i32) -> i32 {
    %c0_i32 = arith.constant 0 : i32
    %c0_i32_0 = arith.constant 0 : i32
    return %c0_i32 : i32
  }
  func.func @transform_12(%arg0: i32, %arg1: i32) -> (i32, i32, i32) {
    %c0_i32 = arith.constant 0 : i32
    %c0_i32_0 = arith.constant 0 : i32
    %c0_i32_1 = arith.constant 0 : i32
    return %arg0, %c0_i32, %c0_i32_0 : i32, i32, i32
  }
}

</mosaic_0001>

<bundles_post_ra>
// kernel: tpu_custom_call.1
= control target key start
LH: loop header
LB: loop body
LE: loop exit
PB: predicated region body
PF: predicated region fallthrough
CT: control target
= control target key end

     0   :  { %s4110_s0 = inlined_call_operand.hbm [shape: f32[2,8,32], index: 0, kind: input, shape index: {}]   ;;  %s4111_s1 = inlined_call_operand.hbm [shape: f32[2,1,8], index: 1, kind: input, shape index: {}]   ;;  %s4112_s2 = inlined_call_operand.vmem [shape: bf16[2,32,32], index: 2, kind: input, shape index: {}]   ;;  %s4113_s3 = inlined_call_operand.vmem [shape: bf16[2,32,32], index: 3, kind: input, shape index: {}]   ;;  %s4114_s4 = inlined_call_operand.vmem [shape: bf16[2,32,32], index: 4, kind: input, shape index: {}]   ;;  %s4115_s5 = inlined_call_operand.hbm [shape: bf16[2,32,32], index: 5, kind: input, shape index: {}]   ;;  %s4116_s6 = inlined_call_operand.hbm [shape: bf16[2,32,64], index: 6, kind: input, shape index: {}]   ;;  %s4117_s7 = inlined_call_operand.vmem [shape: f32[2,1,64], index: 7, kind: input, shape index: {}]   ;;  %s4118_s8 = inlined_call_operand.vmem [shape: bf16[2,64,32], index: 8, kind: input, shape index: {}]   ;;  %s4119_s9 = inlined_call_operand.vmem [shape: f32[2,1,32], index: 9, kind: input, shape index: {}]   ;;  %s4120_s10 = inlined_call_operand.vmem [shape: f32[2,4], index: 10, kind: input, shape index: {}]   ;;  %s4121_s11 = inlined_call_operand.vmem [shape: f32[2], index: 11, kind: input, shape index: {}]   ;;  %s4122_s12 = inlined_call_operand.hbm [shape: f32[2,8,32], index: 12, kind: output, shape index: {}]  }
   0x1   :  { %4133 = sst [smem:[#allocation23_spill]] %s4110_s0 }
   0x2   :  { %4134 = sst [smem:[#allocation24_spill]] %s4111_s1 }
   0x3   :  { %4135 = sst [smem:[#allocation25_spill]] %s4112_s2 }
   0x4   :  { %4136 = sst [smem:[#allocation26_spill]] %s4114_s4 }
   0x5   :  { %4137 = sst [smem:[#allocation27_spill]] %s4115_s5 }
   0x6   :  { %4138 = sst [smem:[#allocation28_spill]] %s4118_s8 }
   0x7   :  { %4139 = sst [smem:[#allocation29_spill]] %s4119_s9 }
   0x8   :  { %4140 = sst [smem:[#allocation30_spill]] %s4122_s12 }
   0x9   :  { %17 = vsyncpa [#allocation4], 0 }
   0xa   :  { %18 = vsyncpa [#allocation8], 0 }
   0xb   :  { %19 = vsyncpa [#allocation6], 0 }
   0xc   :  { %20 = vsyncpa [#allocation13], 0 }
   0xd   :  { %21 = vsyncpa [#allocation5], 0  ;;  %s3593_s21 = smov 0   ;;  %s3595_s22 = smov 0  }
   0xe   :  { %s3597_s23 = smov 0   ;;  %s3599_s24 = smov 0  }
   0xf   :  { %s3601_s25 = smov 0   ;;  %s3603_s26 = smov 0  }
  0x10 LB: > { %s3622_s27 = sadd.s32 4294967295, %s3503_s26   ;;  %p189_p0 = scmp.ne.s32.totalorder %s3487_s22, %s3483_s21  ;;  %s3503_s26 = sphi %s3603_s26, %s27_s26   ;;  %s3499_s25 = sphi %s3601_s25, %s4182_s25   ;;  %s3495_s24 = sphi %s3599_s24, %s4181_s24   ;;  %s3491_s23 = sphi %s3597_s23, %s4180_s23   ;;  %s3487_s22 = sphi %s3595_s22, %s4179_s22   ;;  %s3483_s21 = sphi %s3593_s21, %s4178_s21  }
  0x11   : > { %p4127_p1 = scmp.eq.s32.totalorder %s3622_s27, 0  ;;  %p2805_p2 = scmp.ge.s32.totalorder %s3503_s26, 1 }
  0x12   : > { %p372_p3 = scmp.lt.s32.totalorder %s3503_s26, 3  ;;  %s3505_s30 = smov [#allocation3]  }
  0x13   : > { %p3630_p4 = por %p4127_p1, %p189_p0  ;;  %s387_s13 = sshll.u32 %s3505_s30, 4  ;;  %s388_s13 = int_to_ptr.vmem [resolvable:$true] %s387_s13 }
  0x14   : > { %p3634_p5 = pnand %p2805_p2, %p372_p3  ;;  %s36_s15 = sadd.s32 1, %s3499_s25 }
  0x15   : > { %s4141_s28 = scalar_select %p3630_p4, 1, 0 }
  0x16   : > { %s4142_s29 = scalar_select %p3634_p5, 1, 0 }
  0x17   : > { %p3101_p6 = pneg %p3634_p5  ;;  %s3282_s16 = scalar_lea.vmem %s388_s13, 256 }
  0x18   : > { %p3283_p9 = scmp.ne.s32.totalorder %s388_s13, %s3282_s16  ;;  %p3290_p12 = scmp.lt.s32.totalorder %s388_s13, %s388_s13 }
  0x19   : > { %p3642_p7 = pnand %p3101_p6, %p4127_p1  ;;  %p3291_p13 = scmp.lt.s32.totalorder %s3282_s16, %s3282_s16 }
  0x1b   : > { %p3273_p8 = pneg %p3642_p7  ;;  %p3292_p0 = por %p3291_p13, %p3290_p12 }
  0x1d   : > { %p3285_p10 = pnand %p3283_p9, %p3273_p8 }
  0x1f   : > { %p3286_p11 = pneg %p3285_p10 }
  0x21   : > { %p3293_p2 = pnand %p3292_p0, %p3286_p11 }
  0x23   : > { %3296 = shalt.err (!%p3293_p2)
}
  0x24   : > { %s3506_s17 = smov 128   ;;  %s3507_s18 = smov 8  }
  0x25   : > { %s4144_s0 = sld [smem:[#allocation23_spill]]  ;;  %p37_p3 = scmp.ge.s32.totalorder %s36_s15, 2 }
  0x26   : > { %s176_s21 = sadd.s32 1, %s3491_s23  ;;  %p183_p6 = scmp.ne.s32.totalorder %s3491_s23, %s3487_s22 }
  0x27   : > { %p184_p9 = scmp.eq.s32.totalorder %s3503_s26, 0  ;;  %s4184_s15 = smov (%p37_p3, %s36_s15), 0 }
  0x28   : > { %4145 = sst [smem:[#allocation21_spill]] %s4184_s15  ;;  %p3125_p11 = scmp.lt.s32.totalorder %s3503_s26, 2 }
  0x29   : > { %p185_p10 = por %p184_p9, %p183_p6  ;;  %s173_s30 = ssub.s32 %s3499_s25, %s4184_s15 }
  0x2a   : > { %s463_s16 = sand.u32 1, %s3503_s26   ;;  %p174_p12 = scmp.eq.s32.totalorder %s173_s30, 0 }
  0x2b   : > { %3104 = dma.hbm_to_vmem [thread:$0]  (!%p3642_p7), %s4144_s0, 256, %s388_s13, [#allocation4], %s3506_s17, %s3506_s17, %s3507_s18  }
  0x2c   : > { %s465_s12 = sand.u32 1, %s3491_s23   ;;  %s4123_s9 = sshll.u32 %s3499_s25, 8 }
  0x2d   : > { %s3670_s8 = scalar_select %p174_p12, %s3491_s23, %s176_s21  }
  0x2e   : > { %s3672_s4 = sshll.u32 %s465_s12, 4  ;;  %s4147_s5 = sld [smem:[#allocation27_spill]] }
  0x2f   : > { %4146 = sst [smem:[#allocation22_spill]] %s3670_s8  ;;  %p3679_p13 = pnand %p3125_p11, %p185_p10 }
  0x30   : > { %s467_s20 = scalar_lea.vmem [#allocation9], %s3672_s4  ;;  %s3684_s0 = scalar_lea.sflag [#allocation4], %s463_s16 }
  0x31   : > { %s4148_s19 = scalar_select %p3679_p13, 1, 0 }
  0x32   : > { %s474_s30 = sshll.u32 %s467_s20, 4  ;;  %p4128_p0 = pneg %p3679_p13  ;;  %s475_s30 = int_to_ptr.vmem [resolvable:$true] %s474_s30 }
  0x33   : > { %s3310_s12 = scalar_lea.vmem %s475_s30, 256  ;;  %s3508_s21 = smov [#allocation9]  }
  0x34   : > { %s473_s18 = scalar_lea.hbm %s4147_s5, %s4123_s9  ;;  %p3311_p2 = scmp.ne.s32.totalorder %s475_s30, %s3310_s12 }
  0x35   : > { %s3315_s13 = sshll.u32 %s3508_s21, 4  ;;  %s3316_s13 = int_to_ptr.vmem [resolvable:$false] %s3315_s13 }
  0x36   : > { %p3313_p3 = pnand %p3311_p2, %p4128_p0  ;;  %s3317_s17 = scalar_lea.vmem %s3316_s13, 512 }
  0x37   : > { %p3318_p9 = scmp.lt.s32.totalorder %s475_s30, %s3316_s13  ;;  %p3319_p10 = scmp.lt.s32.totalorder %s3317_s17, %s3310_s12 }
  0x38   : > { %p3314_p6 = pneg %p3313_p3 }
  0x39   : > { %p3320_p11 = por %p3319_p10, %p3318_p9 }
  0x3b   : > { %p3321_p12 = pnand %p3320_p11, %p3314_p6 }
  0x3d   : > { %3324 = shalt.err (!%p3321_p12)
}
  0x3e   : > { %s4124_s20 = smov 64   ;;  %s4125_s16 = smov 4  }
  0x3f   : > { %3117 = dma.hbm_to_vmem [thread:$0]  (!%p3679_p13), %s473_s18, 256, %s475_s30, %s3684_s0, %s4124_s20, %s4124_s20, %s4125_s16  }
  0x40   : > { %s3511_s9 = smov [#allocation7]  }
  0x41   : > { %s403_s5 = sshll.u32 %s3511_s9, 4  ;;  %s404_s5 = int_to_ptr.vmem [resolvable:$true] %s403_s5 }
  0x42   : > { %s3336_s21 = scalar_lea.vmem %s404_s5, 32  ;;  %p3344_p9 = scmp.lt.s32.totalorder %s404_s5, %s404_s5 }
  0x43   : > { %p3337_p2 = scmp.ne.s32.totalorder %s404_s5, %s3336_s21  ;;  %p3345_p10 = scmp.lt.s32.totalorder %s3336_s21, %s3336_s21 }
  0x45   : > { %p3339_p3 = pnand %p3337_p2, %p3273_p8  ;;  %p3346_p11 = por %p3345_p10, %p3344_p9 }
  0x47   : > { %p3340_p6 = pneg %p3339_p3 }
  0x49   : > { %p3347_p12 = pnand %p3346_p11, %p3340_p6 }
  0x4b   : > { %3350 = shalt.err (!%p3347_p12)
}
  0x4c   : > { %s3512_s12 = smov 16   ;;  %s3513_s13 = smov 1  }
  0x4d   : > { %s4149_s1 = sld [smem:[#allocation24_spill]]  ;;  %s417_s20 = sshll.u32 %s4120_s10, 4  ;;  %s418_s20 = int_to_ptr.vmem [resolvable:$true] %s417_s20 }
  0x4e   : > { %s428_s21 = sshll.u32 %s4121_s11, 4  ;;  %s3351_s8 = scalar_lea.vmem %s418_s20, 32  ;;  %s429_s21 = int_to_ptr.vmem [resolvable:$true] %s428_s21 }
  0x4f   : > { %p3352_p2 = scmp.ne.s32.totalorder %s418_s20, %s3351_s8  ;;  %p3359_p9 = scmp.lt.s32.totalorder %s418_s20, %s418_s20 }
  0x50   : > { %p3360_p10 = scmp.lt.s32.totalorder %s3351_s8, %s3351_s8 }
  0x51   : > { %p3354_p3 = pnand %p3352_p2, %p3273_p8 }
  0x52   : > { %p3361_p11 = por %p3360_p10, %p3359_p9 }
  0x53   : > { %3107 = dma.hbm_to_vmem [thread:$0]  (!%p3642_p7), %s4149_s1, 32, %s404_s5, [#allocation8], %s3512_s12, %s3512_s12, %s3513_s13  }
  0x54   : > { %p3355_p6 = pneg %p3354_p3 }
  0x56   : > { %p3362_p12 = pnand %p3361_p11, %p3355_p6 }
  0x58   : > { %3365 = shalt.err (!%p3362_p12)
}
  0x59   : > { %s3514_s5 = smov [#allocation11]   ;;  %s3366_s12 = scalar_lea.vmem %s429_s21, 16 }
  0x5a   : > { %3110 = dma.vmem_to_smem (!%p3642_p7), %s418_s20, 32, %s3514_s5, [#allocation6]  }
  0x5b   : > { %p3367_p1 = scmp.ne.s32.totalorder %s429_s21, %s3366_s12  ;;  %p3374_p5 = scmp.lt.s32.totalorder %s429_s21, %s429_s21 }
  0x5c   : > { %p3375_p2 = scmp.lt.s32.totalorder %s3366_s12, %s3366_s12 }
  0x5d   : > { %p3369_p0 = pnand %p3367_p1, %p3273_p8 }
  0x5e   : > { %p3376_p3 = por %p3375_p2, %p3374_p5 }
  0x5f   : > { %p3370_p4 = pneg %p3369_p0 }
  0x61   : > { %p3377_p13 = pnand %p3376_p3, %p3370_p4 }
  0x63   : > { %3380 = shalt.err (!%p3377_p13)
}
  0x64   : > { %s3515_s8 = smov [#allocation12]   ;;  %s4150_s15 = sshll.u32 %s3499_s25, 8 }
  0x65   : > { %3113 = dma.vmem_to_smem (!%p3642_p7), %s429_s21, 16, %s3515_s8, [#allocation13]  }
  0x66   : > { %s494_s13 = scalar_lea.hbm %s4116_s6, %s4150_s15  ;;  %s488_s18 = scalar_lea.vmem [#allocation10], %s3672_s4 }
  0x67   : > { %s495_s30 = sshll.u32 %s488_s18, 4  ;;  %p4151_p5 = scmp.ne.s32.totalorder %s4148_s19, 0  ;;  %s496_s30 = int_to_ptr.vmem [resolvable:$true] %s495_s30 }
  0x68   : > { %s3394_s9 = scalar_lea.vmem %s496_s30, 256  ;;  %s3516_s17 = smov [#allocation10]  }
  0x69   : > { %p3395_p1 = scmp.ne.s32.totalorder %s496_s30, %s3394_s9  ;;  %p4152_p4 = pneg %p4151_p5 }
  0x6a   : > { %s3399_s14 = sshll.u32 %s3516_s17, 4  ;;  %s3400_s14 = int_to_ptr.vmem [resolvable:$false] %s3399_s14 }
  0x6b   : > { %p3397_p8 = pnand %p3395_p1, %p4152_p4  ;;  %s3401_s5 = scalar_lea.vmem %s3400_s14, 512 }
  0x6c   : > { %p3402_p0 = scmp.lt.s32.totalorder %s496_s30, %s3400_s14  ;;  %p3403_p7 = scmp.lt.s32.totalorder %s3401_s5, %s3394_s9 }
  0x6d   : > { %p3398_p13 = pneg %p3397_p8 }
  0x6e   : > { %p3404_p6 = por %p3403_p7, %p3402_p0 }
  0x70   : > { %p3405_p9 = pnand %p3404_p6, %p3398_p13 }
  0x72   : > { %3408 = shalt.err (!%p3405_p9)
}
  0x73   : > { %s4153_s4 = smov 4   ;;  %s4154_s21 = smov 64  }
  0x74   : > { %3120 = dma.hbm_to_vmem [thread:$0]  (!%p4151_p5), %s494_s13, 256, %s496_s30, %s3684_s0, %s4154_s21, %s4154_s21, %s4153_s4  }
  0x75   : > { %p4155_p10 = scmp.ne.s32.totalorder %s4142_s29, 0 }
  0x76   : > { %p4156_p11 = scmp.eq.s32.totalorder (!%p4155_p10), %s3622_s27, 0 }
  0x77   : > { %527 = sbr.rel (%p4155_p10) target bundleno = 4347 (0x10fb), region = 68 }
  0x7c   : > { %3458 = dma.done.wait (%p4156_p11), [#allocation4], 256   ;;  %p4157_p12 = pmov %p4156_p11 }
  0x7d   : > { %p4158_p2 = pmov %p4156_p11 }
  0x7e   : > { %3460 = vsyncadd (%p4157_p12), [#allocation4], 4294967040 }
  0x7f   : > { %3462 = dma.done.wait (%p4158_p2), [#allocation8], 32   ;;  %p4159_p3 = pmov %p4158_p2 }
  0x80   : > { %s537_s19 = sand.u32 1, %s3622_s27   ;;  %s539_s0 = sand.u32 1, %s3487_s22  }
  0x81   : > { %3464 = vsyncadd (%p4159_p3), [#allocation8], 4294967264  ;;  %s3748_s12 = sshll.u32 %s539_s0, 4  ;;  %s538_s29 = scalar_lea.sflag [#allocation4], %s537_s19 }
  0x82   : > { %p4160_p1 = scmp.ne.s32.totalorder %s4141_s28, 0 }
  0x84   : > { %3466 = dma.done.wait (%p4160_p1), %s538_s29, 512  }
  0x85   : > { %3468 = vsyncadd (%p4160_p1), %s538_s29, 4294966784  ;;  %p4161_p5 = pmov %p4158_p2 }
  0x86   : > { %p4162_p4 = pmov %p4158_p2 }
  0x87   : > { %3470 = dma.done.wait (%p4161_p5), [#allocation6], 32  }
  0x88   : > { %3472 = vsyncadd (%p4162_p4), [#allocation6], 4294967264  ;;  %p4163_p8 = pmov %p4158_p2 }
  0x89   : > { %p4164_p13 = pmov %p4158_p2 }
  0x8a   : > { %3474 = dma.done.wait (%p4163_p8), [#allocation13], 16  }
  0x8b   : > { %3476 = vsyncadd (%p4164_p13), [#allocation13], 4294967280 }
  0x8c   : > { %563 = sfence }
  0x8d   : > { %p628_p0 = scmp.lt.s32.totalorder %s3495_s24, 1  ;;  %s4165_s2 = sld [smem:[#allocation25_spill]] }
  0x8e   : > { %s4166_s0 = sld [smem:[#allocation26_spill]]  ;;  %p2832_p7 = scmp.ne.s32.totalorder %s3495_s24, 0 }
  0x8f   : > { %s3766_s28 = scalar_select %p628_p0, %s3495_s24, 1 }
  0x90   : > { %s4167_s16 = sld [smem:[#allocation28_spill]] }
  0x91   : > { %s2889_s20 = sshll.u32 %s3766_s28, 4  ;;  %s2892_s15 = sshll.u32 %s3766_s28, 5 }
  0x92   : > { %s3781_s4 = scalar_lea.vmem %s4113_s3, %s2889_s20  ;;  %s4168_s9 = sld [smem:[#allocation29_spill]] }
  0x93   : > { %s3776_s17 = scalar_lea.vmem %s4165_s2, %s2889_s20 }
  0x94   : > { %s3786_s29 = scalar_lea.vmem %s4166_s0, %s2889_s20  ;;  %659 = sbr.rel (%p2832_p7) target bundleno = 155 (0x9b), region = 96 }
  0x96   : > { %s3792_s13 = scalar_lea.vmem %s4167_s16, %s2892_s15 }
  0x98   : > { %s653_s2 = scalar_lea.vmem %s4168_s9, %s3766_s28 }
  0x99   : > { %v660_v0 = vld [vmem:[#allocation3] sm:$0xff]  ;;  %vm662_vm0 = vcmask 261120   ;;  %v661_v1 = vld [vmem:[#allocation3 + $0x8] sm:$0xff] }
  0x9a   : > { %663 = vst.msk [vmem:[#allocation14] sm:$0xff] %vm662_vm0, %v660_v0  ;;  %664 = vst.msk [vmem:[#allocation14 + $0x8] sm:$0xff] %vm662_vm0, %v661_v1 }
  0x9b PF: > { %vm675_vm1 = vcmask 261120   ;;  %v3201_v16 = vld [vmem:[%s3776_s17 + $0x8] sm:$0xff]   ;;  %v3517_v18 = vmov 0.0   ;;  %v3203_v19 = vld [vmem:[%s3776_s17] sm:$0xff]   ;;  %vm3518_vm2 = vmmov 0   ;;  %s3826_s1 = sshll.u32 %s3495_s24, 7  ;;  %v1055_v0 = vlaneseq }
  0x9c   : > { %v3202_v17 = vld [vmem:[%s3786_s29 + $0x8] sm:$0xff]   ;;  %2945 = vmatprep.subr.bf16.mxu1 %v3517_v18  ;;  %2961 = vmatprep.subr.bf16.mxu0 %v3517_v18  ;;  %v3204_v20 = vld [vmem:[%s3786_s29] sm:$0xff]   ;;  %s672_s8 = sld [smem:[#allocation11 + %s3826_s1]]  ;;  %s673_s15 = sadd.s32 1, %s3826_s1  ;;  %vm900_vm7 = vcmask 64512   ;;  %vm1579_vm12 = vcmask 130112  }
  0x9d   : > { %2946 = vmatpush3.bf16.msra.mxu1 %v3201_v16  ;;  %2962 = vmatpush3.bf16.msra.mxu0 %v3202_v17  ;;  %s674_s20 = sld [smem:[#allocation11 + %s673_s15]]  ;;  %v3205_v47 = vld [vmem:[%s3781_s4 + $0x8] sm:$0xff]   ;;  %v3206_v49 = vld [vmem:[%s3781_s4] sm:$0xff]   ;;  %s3520_s18 = smov 120   ;;  %vm1922_vm13 = vcmask 195712   ;;  %vm2265_vm14 = vcmask 261312  }
  0x9e   : > { %2947 = vmatprep.subr.bf16.mxu1 %v3517_v18  ;;  %2963 = vmatprep.subr.bf16.mxu0 %v3517_v18  ;;  %v667_v1 = vld [vmem:[#allocation7] sm:$0x1]  ;;  %s3521_s17 = smov 112   ;;  %s3522_s14 = smov 104  }
  0x9f   : > { %2949 = vmatprep.mubr.msk.bf16.mxu1 %vm3518_vm2, %v3517_v18  ;;  %2965 = vmatprep.mubr.msk.bf16.mxu0 %vm3518_vm2, %v3517_v18  ;;  %vm669_vm8 = vcmp.eq.f32.partialorder %v667_v1, 0.0  ;;  %s3523_s5 = smov 8   ;;  %s3524_s4 = smov 16  }
  0xa0   : > { %s4169_s21 = scalar_lea.vmem [#allocation9], %s3748_s12  ;;  %s3525_s0 = smov 24  }
  0xa1   : > { %v3799_v2 = vld [vmem:[#allocation14] sm:$0xff]  ;;  %v3801_v3 = vld [vmem:[#allocation14 + $0x8] sm:$0xff]  ;;  %2948 = vmatpush3.bf16.msra.mxu1 %v3203_v19  ;;  %2964 = vmatpush3.bf16.msra.mxu0 %v3204_v20  ;;  %s4170_s19 = smov %s4169_s21  ;;  %s4171_s29 = scalar_lea.vmem [#allocation10], %s3748_s12 }
  0xa2   : > { %v676_v4 = vsel %vm675_vm1, %v3799_v2, 0.0  ;;  %v679_v5 = vsel %vm675_vm1, %v3801_v3, 0.0  ;;  %2953 = vmatprep.subr.bf16.mxu1 %v3517_v18  ;;  %2979 = vmatprep.subr.mxu0 %v3517_v18  ;;  %v717_v39 = vstv %s672_s8  ;;  %s4172_s16 = smov %s4171_s29  ;;  %s2333_s12 = sadd.s32 2, %s3826_s1 }
  0xa3   : > { %677 = vadd.xlane.f32.xlu0 %v676_v4  ;;  %v720_v43 = vstv %s674_s20  ;;  %v1056_v4 = vshrl.u32 %v1055_v0, 7  ;;  %s2334_s30 = sld [smem:[#allocation11 + %s2333_s12]]  ;;  %s2335_s9 = sadd.s32 3, %s3826_s1 }
  0xa4   : > { %s2336_s8 = sld [smem:[#allocation11 + %s2335_s9]]  ;;  %s4173_s20 = scalar_lea.vmem %s4117_s7, %s3766_s28 }
  0xa5   : > { %p2880_p6 = scmp.eq.s32.totalorder %s3495_s24, 1 }
  0xa7   : > { %680 = vadd.xlane.f32.xlu0 %v679_v5  ;;  %v668_v5 = vld [vmem:[#allocation7 + $0x1] sm:$0x1] }
  0xa8   : > { %vm670_vm9 = vcmp.eq.f32.partialorder %v668_v5, 0.0 }
 0x12c   : > { %v678_v6 = vpop.xlane.xlu0 %677 }
 0x12d   : > { %v683_v7 = vmul.f32 0.03125, %v678_v6  ;;  %v1057_v6 = vsub.s32 0, %v1056_v4 }
 0x12f   : > { %v685_v8 = vsub.f32 %v3799_v2, %v683_v7  ;;  %v3519_v7 = vmov 0  }
 0x130   : > { %v681_v9 = vpop.xlane.xlu0 %680 }
 0x131   : > { %v684_v10 = vmul.f32 0.03125, %v681_v9  ;;  %v687_v11 = vmul.f32 %v685_v8, %v685_v8 }
 0x133   : > { %v686_v12 = vsub.f32 %v3801_v3, %v684_v10  ;;  %v689_v13 = vsel %vm675_vm1, %v687_v11, 0.0  ;;  %v1054_v10 = vsel %vm670_vm9, 1, %v3519_v7 }
 0x134   : > { %690 = vadd.xlane.f32.xlu1 %v689_v13  ;;  %v3876_v11 = vrot.slane %v1054_v10, %v1057_v6 }
 0x135   : > { %v688_v14 = vmul.f32 %v686_v12, %v686_v12 }
 0x136   : > { %vm1064_vm11 = vcmp.eq.s32.totalorder %v3876_v11, 1 }
 0x137   : > { %v692_v15 = vsel %vm675_vm1, %v688_v14, 0.0 }
 0x138   : > { %693 = vadd.xlane.f32.xlu1 %v692_v15 }
 0x1bd   : > { %v691_v21 = vpop.xlane.xlu1 %690 }
 0x1be   : > { %v695_v22 = vmul.f32 0.032258064, %v691_v21 }
 0x1c0   : > { %3215 = vrsqrt.f32 %v695_v22  ;;  %vm699_vm3 = vcmp.eq.f32.partialorder %v695_v22, inf  ;;  %v702_v27 = vand.u32 2147483648, %v695_v22  ;;  %vm701_vm4 = vcmp.eq.f32.partialorder %v695_v22, 0.0 }
 0x1c1   : > { %v694_v23 = vpop.xlane.xlu1 %693 }
 0x1c2   : > { %v696_v24 = vmul.f32 0.032258064, %v694_v23 }
 0x1c4   : > { %3217 = vrsqrt.f32 %v696_v24  ;;  %vm706_vm5 = vcmp.eq.f32.partialorder %v696_v24, inf  ;;  %v709_v33 = vand.u32 2147483648, %v696_v24  ;;  %vm708_vm6 = vcmp.eq.f32.partialorder %v696_v24, 0.0 }
 0x1cd   : > { %v3216_v25 = vpop.eup %3215 }
 0x1ce   : > { %v698_v26 = vmul.f32 %v3216_v25, %v695_v22 }
 0x1d0   : > { %v700_v28 = vsel %vm699_vm3, %v695_v22, %v698_v26 }
 0x1d1   : > { %v3218_v29 = vpop.eup %3217  ;;  %v703_v30 = vsel %vm701_vm4, %v702_v27, %v700_v28  ;;  %vm2493_vm4 = vcmask 523264  }
 0x1d2   : > { %v711_v31 = vadd.f32 1e-06, %v703_v30  ;;  %v705_v32 = vmul.f32 %v3218_v29, %v696_v24 }
 0x1d4   : > { %3219 = vrcp.f32 %v711_v31  ;;  %v707_v34 = vsel %vm706_vm5, %v696_v24, %v705_v32 }
 0x1d5   : > { %v710_v35 = vsel %vm708_vm6, %v709_v33, %v707_v34 }
 0x1d6   : > { %v712_v36 = vadd.f32 1e-06, %v710_v35 }
 0x1d8   : > { %3221 = vrcp.f32 %v712_v36 }
 0x1e1   : > { %v3220_v37 = vpop.eup %3219 }
 0x1e2   : > { %v714_v38 = vmul.f32 %v3220_v37, %v685_v8  ;;  %v1053_v8 = vsel %vm669_vm8, 1, %v3519_v7 }
 0x1e3   : > { %v3873_v9 = vrot.slane %v1053_v8, %v1057_v6 }
 0x1e4   : > { %v718_v42 = vmul.f32 %v717_v39, %v714_v38 }
 0x1e5   : > { %v3222_v40 = vpop.eup %3221  ;;  %vm1063_vm10 = vcmp.eq.s32.totalorder %v3873_v9, 1 }
 0x1e6   : > { %v716_v41 = vmul.f32 %v3222_v40, %v686_v12  ;;  %v721_v45 = vadd.f32 %v720_v43, %v718_v42 }
 0x1e8   : > { %v719_v44 = vmul.f32 %v717_v39, %v716_v41 }
 0x1ea   : > { %v722_v46 = vadd.f32 %v720_v43, %v719_v44 }
 0x1ec   : > { %v727_v48 = vpack.c.bf16 %v722_v46, %v721_v45 }
 0x1ee   : > { %2950 = vmatmul.mubr.msk.bf16.vlgmr.msra.gmra.mxu1 %vm675_vm1, %v727_v48  ;;  %2966 = vmatmul.mubr.msk.bf16.vlgmr.msra.gmra.mxu0 %vm675_vm1, %v727_v48 }
 0x1ef   : > { %2954 = vmatpush3.bf16.msra.mxu1 %v3205_v47  ;;  %2957 = vmatprep.mubr.msk.bf16.mxu1 %vm3518_vm2, %v3517_v18 }
 0x1f0   : > { %2955 = vmatprep.subr.bf16.mxu1 %v3517_v18  ;;  %2981 = vmatprep.mubr.msk.f32.mxu0 %vm3518_vm2, %v3517_v18 }
 0x1f3   : > { %2956 = vmatpush3.bf16.msra.mxu1 %v3206_v49 }
 0x1f4   : > { %2969 = vmatprep.subr.mxu1 %v3517_v18 }
 0x1f6   : > { %2958 = vmatmul.mubr.msk.bf16.vlgmr.msra.gmra.mxu1 %vm675_vm1, %v727_v48 }
 0x1f7   : > { %2971 = vmatprep.mubr.msk.f32.mxu1 %vm3518_vm2, %v3517_v18 }
 0x2ae   : > { %v777_v50 = vpop.f32.mrf.mxu1  ;;  %v3843_v51 = vpop.f32.mrf.mxu0 }
 0x2af   : > { %2980 = vmatpush3.msra.mxu0 %v3843_v51  ;;  %v3853_v59 = vmul.f32 0.35355338, %v777_v50 }
 0x2b0   : > { %v2951_v52 = vpop.f32.mrf.mxu1  ;;  %v2967_v53 = vpop.f32.mrf.mxu0  ;;  %2989 = vmatprep.subr.mxu0 %v3517_v18 }
 0x2b2   : > { %v780_v54 = vpop.f32.mrf.mxu1  ;;  %v3847_v55 = vpop.f32.mrf.mxu0 }
 0x2b3   : > { %v3864_v62 = vmul.f32 0.35355338, %v780_v54 }
 0x2b4   : > { %v2952_v56 = vpop.f32.mrf.mxu1  ;;  %v2968_v57 = vpop.f32.mrf.mxu0 }
 0x2b6   : > { %v3849_v58 = vpop.f32.mrf.mxu1 }
 0x2b7   : > { %2970 = vmatpush3.xpose.msk.msra.mxu1 %vm900_vm7, %v3849_v58 }
 0x2b8   : > { %v2959_v60 = vpop.f32.mrf.mxu1  ;;  %2974 = vmatprep.subr.mxu1 %v3517_v18 }
 0x2ba   : > { %v3856_v61 = vpop.f32.mrf.mxu1  ;;  %2972 = vmatmul.mubr.msk.f32.vlgmr.msra.gmra.mxu1 %vm900_vm7, %v3853_v59 }
 0x2bb   : > { %2975 = vmatpush3.xpose.msk.msra.mxu1 %vm900_vm7, %v3856_v61  ;;  %2976 = vmatprep.mubr.msk.f32.mxu1 %vm3518_vm2, %v3517_v18 }
 0x2bc   : > { %v2960_v63 = vpop.f32.mrf.mxu1  ;;  %2984 = vmatprep.subr.mxu1 %v3517_v18 }
 0x2be   : > { %2977 = vmatmul.mubr.msk.f32.vlgmr.msra.gmra.mxu1 %vm900_vm7, %v3864_v62 }
 0x2bf   : > { %2985 = vmatpush3.msra.mxu1 %v3847_v55  ;;  %2986 = vmatprep.mubr.msk.f32.mxu1 %vm3518_vm2, %v3517_v18 }
 0x2c0   : > { %2994 = vmatprep.subr.mxu1 %v3517_v18 }
 0x37a   : > { %v973_v12 = vpop.f32.mrf.mxu1 }
 0x37b   : > { %v1065_v13 = vsel %vm1063_vm10, -1e+09, %v973_v12 }
 0x37c   : > { %v2973_v14 = vpop.f32.mrf.mxu1  ;;  %v1067_v15 = vsel %vm900_vm7, %v1065_v13, -inf }
 0x37d   : > { %1068 = vmax.xlane.f32.xlu0 %v1067_v15 }
 0x37e   : > { %v1049_v16 = vpop.f32.mrf.mxu1 }
 0x37f   : > { %v1066_v17 = vsel %vm1064_vm11, -1e+09, %v1049_v16 }
 0x380   : > { %v2978_v19 = vpop.f32.mrf.mxu1  ;;  %v1070_v20 = vsel %vm900_vm7, %v1066_v17, -inf }
 0x381   : > { %1071 = vmax.xlane.f32.xlu1 %v1070_v20 }
 0x392   : > { %1317 = vrot.lane.b32.xlu1 %v3856_v61, %s3520_s18 }
 0x396   : > { %1237 = vrot.lane.b32.xlu1 %v3853_v59, %s3520_s18 }
 0x406   : > { %v1069_v21 = vpop.xlane.xlu0 %1068 }
 0x407   : > { %v1073_v22 = vsub.f32 %v1065_v13, %v1069_v21 }
 0x409   : > { %v1075_v23 = vmul.f32 1.442695, %v1073_v22 }
 0x40a   : > { %v1072_v24 = vpop.xlane.xlu1 %1071 }
 0x40b   : > { %3223 = vpow2.f32 %v1075_v23  ;;  %v1074_v25 = vsub.f32 %v1066_v17, %v1072_v24 }
 0x40d   : > { %v1077_v26 = vmul.f32 1.442695, %v1074_v25 }
 0x40e   : > { %v1318_v31 = vpop.permute.xlu1 %1317 }
 0x40f   : > { %3225 = vpow2.f32 %v1077_v26 }
 0x412   : > { %v1238_v32 = vpop.permute.xlu1 %1237 }
 0x418   : > { %v3224_v27 = vpop.eup %3223 }
 0x419   : > { %v1079_v28 = vsel %vm900_vm7, %v3224_v27, 0.0 }
 0x41a   : > { %1080 = vadd.xlane.f32.xlu0 %v1079_v28 }
 0x41c   : > { %v3226_v29 = vpop.eup %3225 }
 0x41d   : > { %v1082_v30 = vsel %vm900_vm7, %v3226_v29, 0.0 }
 0x41e   : > { %1083 = vadd.xlane.f32.xlu1 %v1082_v30 }
 0x42f   : > { %1315 = vrot.lane.b32.xlu1 %v3864_v62, %s3520_s18 }
 0x430   : > { %1239 = vrot.lane.b32.xlu0 %v3849_v58, %s3520_s18 }
 0x4a3   : > { %v1081_v33 = vpop.xlane.xlu0 %1080 }
 0x4a4   : > { %3227 = vrcp.f32 %v1081_v33 }
 0x4a7   : > { %v1084_v34 = vpop.xlane.xlu1 %1083  ;;  %v1240_v37 = vpop.permute.xlu0 %1239 }
 0x4a8   : > { %3229 = vrcp.f32 %v1084_v34 }
 0x4ab   : > { %v1316_v40 = vpop.permute.xlu1 %1315 }
 0x4b1   : > { %v3228_v35 = vpop.eup %3227 }
 0x4b2   : > { %v1087_v36 = vmul.f32 %v3228_v35, %v3224_v27 }
 0x4b4   : > { %2982 = vmatmul.mubr.msk.f32.vlgmr.msra.gmra.mxu0 %vm900_vm7, %v1087_v36 }
 0x4b5   : > { %v3230_v38 = vpop.eup %3229  ;;  %2990 = vmatpush3.xpose.msk.msra.mxu0 %vm900_vm7, %v1240_v37  ;;  %2991 = vmatprep.mubr.msk.f32.mxu0 %vm3518_vm2, %v3517_v18 }
 0x4b6   : > { %v1088_v39 = vmul.f32 %v3230_v38, %v3226_v29  ;;  %2999 = vmatprep.subr.mxu0 %v3517_v18 }
 0x4b8   : > { %2987 = vmatmul.mubr.msk.f32.vlgmr.msra.gmra.mxu1 %vm900_vm7, %v1088_v39  ;;  %2992 = vmatmul.mubr.msk.f32.vlgmr.msra.gmra.mxu0 %vm900_vm7, %v1238_v32 }
 0x4b9   : > { %2995 = vmatpush3.xpose.msk.msra.mxu1 %vm900_vm7, %v1318_v31  ;;  %2996 = vmatprep.mubr.msk.f32.mxu1 %vm3518_vm2, %v3517_v18 }
 0x4ba   : > { %3004 = vmatprep.subr.mxu1 %v3517_v18  ;;  %3001 = vmatprep.mubr.msk.f32.mxu0 %vm3518_vm2, %v3517_v18 }
 0x4bc   : > { %2997 = vmatmul.mubr.msk.f32.vlgmr.msra.gmra.mxu1 %vm900_vm7, %v1316_v40 }
 0x4bd   : > { %3006 = vmatprep.mubr.msk.f32.mxu1 %vm3518_vm2, %v3517_v18 }
 0x574   : > { %v1158_v41 = vpop.f32.mrf.mxu0 }
 0x575   : > { %1235 = vst.msk [vmem:[#allocation2] sm:$0xff] %vm900_vm7, %v1158_v41 }
 0x576   : > { %v2983_v42 = vpop.f32.mrf.mxu0 }
 0x578   : > { %v1231_v43 = vpop.f32.mrf.mxu1  ;;  %v1311_v44 = vpop.f32.mrf.mxu0 }
 0x579   : > { %1236 = vst.msk [vmem:[#allocation2 + $0x8] sm:$0xff] %vm900_vm7, %v1231_v43  ;;  %v1393_v45 = vsel %vm1063_vm10, -1e+09, %v1311_v44 }
 0x57a   : > { %v2988_v46 = vpop.f32.mrf.mxu1  ;;  %v2993_v47 = vpop.f32.mrf.mxu0  ;;  %v1395_v48 = vsel %vm900_vm7, %v1393_v45, -inf }
 0x57b   : > { %1396 = vmax.xlane.f32.xlu0 %v1395_v48 }
 0x57c   : > { %v1389_v49 = vpop.f32.mrf.mxu1 }
 0x57d   : > { %v1394_v50 = vsel %vm1064_vm11, -1e+09, %v1389_v49 }
 0x57e   : > { %v2998_v52 = vpop.f32.mrf.mxu1  ;;  %v1398_v53 = vsel %vm900_vm7, %v1394_v50, -inf }
 0x57f   : > { %1399 = vmax.xlane.f32.xlu1 %v1398_v53 }
 0x590   : > { %1495 = vrot.lane.b32.xlu1 %v3847_v55, %s3520_s18 }
 0x594   : > { %1584 = vrot.lane.b32.xlu1 %v3849_v58, %s3521_s17 }
 0x598   : > { %1662 = vrot.lane.b32.xlu1 %v3856_v61, %s3521_s17 }
 0x59c   : > { %1660 = vrot.lane.b32.xlu1 %v3864_v62, %s3521_s17 }
 0x604   : > { %v1397_v54 = vpop.xlane.xlu0 %1396 }
 0x605   : > { %v1401_v56 = vsub.f32 %v1393_v45, %v1397_v54 }
 0x607   : > { %v1403_v57 = vmul.f32 1.442695, %v1401_v56 }
 0x608   : > { %v1400_v60 = vpop.xlane.xlu1 %1399 }
 0x609   : > { %3231 = vpow2.f32 %v1403_v57  ;;  %v1402_v63 = vsub.f32 %v1394_v50, %v1400_v60 }
 0x60b   : > { %v1405_v0 = vmul.f32 1.442695, %v1402_v63 }
 0x60c   : > { %v1496_v1 = vpop.permute.xlu1 %1495 }
 0x60d   : > { %3233 = vpow2.f32 %v1405_v0  ;;  %3005 = vmatpush3.msra.mxu1 %v1496_v1 }
 0x60e   : > { %3014 = vmatprep.subr.mxu1 %v3517_v18 }
 0x610   : > { %v1585_v13 = vpop.permute.xlu1 %1584 }
 0x614   : > { %v1663_v17 = vpop.permute.xlu1 %1662 }
 0x616   : > { %v3232_v4 = vpop.eup %3231 }
 0x617   : > { %v1407_v5 = vsel %vm900_vm7, %v3232_v4, 0.0 }
 0x618   : > { %1408 = vadd.xlane.f32.xlu0 %v1407_v5  ;;  %v1661_v21 = vpop.permute.xlu1 %1660 }
 0x61a   : > { %v3234_v6 = vpop.eup %3233 }
 0x61b   : > { %v1410_v7 = vsel %vm900_vm7, %v3234_v6, 0.0 }
 0x61c   : > { %1411 = vadd.xlane.f32.xlu0 %v1410_v7 }
 0x632   : > { %1418 = vrot.lane.b32.xlu0 %v3843_v51, %s3520_s18 }
 0x636   : > { %1582 = vrot.lane.b32.xlu0 %v3853_v59, %s3521_s17 }
 0x6a1   : > { %v1409_v8 = vpop.xlane.xlu0 %1408 }
 0x6a2   : > { %3235 = vrcp.f32 %v1409_v8 }
 0x6a5   : > { %v1412_v10 = vpop.xlane.xlu0 %1411 }
 0x6a6   : > { %3237 = vrcp.f32 %v1412_v10 }
 0x6a9   : > { %v1419_v12 = vpop.permute.xlu0 %1418 }
 0x6aa   : > { %3000 = vmatpush3.msra.mxu0 %v1419_v12 }
 0x6ab   : > { %3009 = vmatprep.subr.mxu0 %v3517_v18 }
 0x6ad   : > { %v1583_v20 = vpop.permute.xlu0 %1582 }
 0x6af   : > { %v3236_v14 = vpop.eup %3235 }
 0x6b0   : > { %v1415_v15 = vmul.f32 %v3236_v14, %v3232_v4 }
 0x6b2   : > { %3002 = vmatmul.mubr.msk.f32.vlgmr.msra.gmra.mxu0 %vm900_vm7, %v1415_v15 }
 0x6b3   : > { %v3238_v16 = vpop.eup %3237  ;;  %3010 = vmatpush3.xpose.msk.msra.mxu0 %vm900_vm7, %v1585_v13  ;;  %3011 = vmatprep.mubr.msk.f32.mxu0 %vm3518_vm2, %v3517_v18 }
 0x6b4   : > { %v1416_v19 = vmul.f32 %v3238_v16, %v3234_v6  ;;  %3019 = vmatprep.subr.mxu0 %v3517_v18 }
 0x6b6   : > { %3007 = vmatmul.mubr.msk.f32.vlgmr.msra.gmra.mxu1 %vm900_vm7, %v1416_v19  ;;  %3012 = vmatmul.mubr.msk.f32.vlgmr.msra.gmra.mxu0 %vm900_vm7, %v1583_v20 }
 0x6b7   : > { %3015 = vmatpush3.xpose.msk.msra.mxu1 %vm900_vm7, %v1663_v17  ;;  %3016 = vmatprep.mubr.msk.f32.mxu1 %vm3518_vm2, %v3517_v18 }
 0x6b8   : > { %3024 = vmatprep.subr.mxu1 %v3517_v18  ;;  %3021 = vmatprep.mubr.msk.f32.mxu0 %vm3518_vm2, %v3517_v18 }
 0x6ba   : > { %3017 = vmatmul.mubr.msk.f32.vlgmr.msra.gmra.mxu1 %vm900_vm7, %v1661_v21 }
 0x6bb   : > { %3026 = vmatprep.mubr.msk.f32.mxu1 %vm3518_vm2, %v3517_v18 }
 0x772   : > { %v3951_v22 = vpop.f32.mrf.mxu0 }
 0x774   : > { %v3003_v23 = vpop.f32.mrf.mxu0 }
 0x776   : > { %v3953_v24 = vpop.f32.mrf.mxu1  ;;  %v1656_v25 = vpop.f32.mrf.mxu0 }
 0x777   : > { %v1738_v26 = vsel %vm1063_vm10, -1e+09, %v1656_v25 }
 0x778   : > { %v3008_v27 = vpop.f32.mrf.mxu1  ;;  %v3013_v28 = vpop.f32.mrf.mxu0  ;;  %v1740_v29 = vsel %vm900_vm7, %v1738_v26, -inf }
 0x779   : > { %1741 = vmax.xlane.f32.xlu0 %v1740_v29  ;;  %v3207_v29 = vld [vmem:[%s4169_s21 + $0x8] sm:$0xff]  }
 0x77a   : > { %v1734_v30 = vpop.f32.mrf.mxu1 }
 0x77b   : > { %v1739_v31 = vsel %vm1064_vm11, -1e+09, %v1734_v30  ;;  %v3208_v30 = vld [vmem:[%s4170_s19] sm:$0xff]  }
 0x77c   : > { %v3018_v32 = vpop.f32.mrf.mxu1  ;;  %v1743_v33 = vsel %vm900_vm7, %v1739_v31, -inf }
 0x77d   : > { %1744 = vmax.xlane.f32.xlu1 %v1743_v33 }
 0x78e   : > { %1838 = vrot.lane.b32.xlu1 %v3847_v55, %s3521_s17 }
 0x792   : > { %1927 = vrot.lane.b32.xlu1 %v3849_v58, %s3522_s14 }
 0x796   : > { %2005 = vrot.lane.b32.xlu1 %v3856_v61, %s3522_s14 }
 0x79a   : > { %2003 = vrot.lane.b32.xlu1 %v3864_v62, %s3522_s14 }
 0x802   : > { %v1742_v34 = vpop.xlane.xlu0 %1741 }
 0x803   : > { %v1746_v35 = vsub.f32 %v1738_v26, %v1742_v34 }
 0x805   : > { %v1748_v36 = vmul.f32 1.442695, %v1746_v35 }
 0x806   : > { %v1745_v37 = vpop.xlane.xlu1 %1744 }
 0x807   : > { %3239 = vpow2.f32 %v1748_v36  ;;  %v1747_v38 = vsub.f32 %v1739_v31, %v1745_v37 }
 0x809   : > { %v1750_v39 = vmul.f32 1.442695, %v1747_v38 }
 0x80a   : > { %v1839_v40 = vpop.permute.xlu1 %1838 }
 0x80b   : > { %3241 = vpow2.f32 %v1750_v39  ;;  %3025 = vmatpush3.msra.mxu1 %v1839_v40 }
 0x80c   : > { %3034 = vmatprep.subr.mxu1 %v3517_v18 }
 0x80e   : > { %v1928_v45 = vpop.permute.xlu1 %1927 }
 0x812   : > { %v2006_v49 = vpop.permute.xlu1 %2005 }
 0x814   : > { %v3240_v41 = vpop.eup %3239 }
 0x815   : > { %v1752_v58 = vsel %vm900_vm7, %v3240_v41, 0.0 }
 0x816   : > { %1753 = vadd.xlane.f32.xlu0 %v1752_v58  ;;  %v2004_v52 = vpop.permute.xlu1 %2003 }
 0x818   : > { %v3242_v61 = vpop.eup %3241 }
 0x819   : > { %v1755_v42 = vsel %vm900_vm7, %v3242_v61, 0.0 }
 0x81a   : > { %1756 = vadd.xlane.f32.xlu0 %v1755_v42 }
 0x830   : > { %1762 = vrot.lane.b32.xlu0 %v3843_v51, %s3521_s17 }
 0x834   : > { %1925 = vrot.lane.b32.xlu0 %v3853_v59, %s3522_s14 }
 0x89f   : > { %v1754_v62 = vpop.xlane.xlu0 %1753 }
 0x8a0   : > { %3243 = vrcp.f32 %v1754_v62 }
 0x8a3   : > { %v1757_v43 = vpop.xlane.xlu0 %1756 }
 0x8a4   : > { %3245 = vrcp.f32 %v1757_v43 }
 0x8a7   : > { %v1763_v44 = vpop.permute.xlu0 %1762 }
 0x8a8   : > { %3020 = vmatpush3.msra.mxu0 %v1763_v44 }
 0x8a9   : > { %3029 = vmatprep.subr.mxu0 %v3517_v18 }
 0x8ab   : > { %v1926_v50 = vpop.permute.xlu0 %1925 }
 0x8ad   : > { %v3244_v46 = vpop.eup %3243 }
 0x8ae   : > { %v1760_v47 = vmul.f32 %v3244_v46, %v3240_v41 }
 0x8b0   : > { %3022 = vmatmul.mubr.msk.f32.vlgmr.msra.gmra.mxu0 %vm900_vm7, %v1760_v47 }
 0x8b1   : > { %v3246_v48 = vpop.eup %3245  ;;  %3030 = vmatpush3.xpose.msk.msra.mxu0 %vm900_vm7, %v1928_v45  ;;  %3031 = vmatprep.mubr.msk.f32.mxu0 %vm3518_vm2, %v3517_v18 }
 0x8b2   : > { %v1761_v59 = vmul.f32 %v3246_v48, %v3242_v61  ;;  %3039 = vmatprep.subr.mxu0 %v3517_v18 }
 0x8b4   : > { %3027 = vmatmul.mubr.msk.f32.vlgmr.msra.gmra.mxu1 %vm900_vm7, %v1761_v59  ;;  %3032 = vmatmul.mubr.msk.f32.vlgmr.msra.gmra.mxu0 %vm900_vm7, %v1926_v50 }
 0x8b5   : > { %3035 = vmatpush3.xpose.msk.msra.mxu1 %vm900_vm7, %v2006_v49  ;;  %3036 = vmatprep.mubr.msk.f32.mxu1 %vm3518_vm2, %v3517_v18 }
 0x8b6   : > { %3044 = vmatprep.subr.mxu1 %v3517_v18  ;;  %3041 = vmatprep.mubr.msk.f32.mxu0 %vm3518_vm2, %v3517_v18 }
 0x8b8   : > { %3037 = vmatmul.mubr.msk.f32.vlgmr.msra.gmra.mxu1 %vm900_vm7, %v2004_v52 }
 0x8b9   : > { %3046 = vmatprep.mubr.msk.f32.mxu1 %vm3518_vm2, %v3517_v18 }
 0x970   : > { %v1834_v53 = vpop.f32.mrf.mxu0 }
 0x972   : > { %v3023_v54 = vpop.f32.mrf.mxu0 }
 0x973   : > { %v3210_v54 = vld [vmem:[%s4172_s16] sm:$0xff]  }
 0x974   : > { %v1910_v56 = vpop.f32.mrf.mxu1  ;;  %v1999_v57 = vpop.f32.mrf.mxu0 }
 0x975   : > { %v2081_v60 = vsel %vm1063_vm10, -1e+09, %v1999_v57 }
 0x976   : > { %v3028_v63 = vpop.f32.mrf.mxu1  ;;  %v3033_v0 = vpop.f32.mrf.mxu0  ;;  %v2083_v1 = vsel %vm900_vm7, %v2081_v60, -inf }
 0x977   : > { %2084 = vmax.xlane.f32.xlu0 %v2083_v1 }
 0x978   : > { %v2077_v4 = vpop.f32.mrf.mxu1 }
 0x979   : > { %v2082_v5 = vsel %vm1064_vm11, -1e+09, %v2077_v4 }
 0x97a   : > { %v3038_v6 = vpop.f32.mrf.mxu1  ;;  %v2086_v7 = vsel %vm900_vm7, %v2082_v5, -inf }
 0x97b   : > { %2087 = vmax.xlane.f32.xlu1 %v2086_v7 }
 0x98c   : > { %2181 = vrot.lane.b32.xlu1 %v3847_v55, %s3522_s14 }
 0x990   : > { %1573 = vrot.lane.b32.xlu1 %v3951_v22, %s3523_s5 }
 0x994   : > { %1575 = vrot.lane.b32.xlu1 %v3953_v24, %s3523_s5 }
 0x998   : > { %1918 = vrot.lane.b32.xlu1 %v1910_v56, %s3524_s4  ;;  %v3211_v56 = vld [vmem:[%s3792_s13 + $0x18] sm:$0xff]  }
 0xa00   : > { %v2085_v9 = vpop.xlane.xlu0 %2084 }
 0xa01   : > { %v2089_v8 = vsub.f32 %v2081_v60, %v2085_v9 }
 0xa03   : > { %v2091_v11 = vmul.f32 1.442695, %v2089_v8 }
 0xa04   : > { %v2088_v10 = vpop.xlane.xlu1 %2087 }
 0xa05   : > { %3247 = vpow2.f32 %v2091_v11  ;;  %v2090_v12 = vsub.f32 %v2082_v5, %v2088_v10 }
 0xa07   : > { %v2093_v13 = vmul.f32 1.442695, %v2090_v12 }
 0xa08   : > { %v2182_v14 = vpop.permute.xlu1 %2181 }
 0xa09   : > { %3249 = vpow2.f32 %v2093_v13  ;;  %3045 = vmatpush3.msra.mxu1 %v2182_v14 }
 0xa0a   : > { %3057 = vmatprep.subr.bf16.mxu1 %v3517_v18 }
 0xa0c   : > { %v1574_v55 = vpop.permute.xlu1 %1573 }
 0xa0d   : > { %1580 = vst.msk [vmem:[#allocation2] sm:$0xff] %vm1579_vm12, %v1574_v55 }
 0xa10   : > { %v1576_v15 = vpop.permute.xlu1 %1575 }
 0xa11   : > { %1581 = vst.msk [vmem:[#allocation2 + $0x8] sm:$0xff] %vm1579_vm12, %v1576_v15 }
 0xa12   : > { %v3248_v16 = vpop.eup %3247 }
 0xa13   : > { %v2095_v17 = vsel %vm900_vm7, %v3248_v16, 0.0 }
 0xa14   : > { %2096 = vadd.xlane.f32.xlu0 %v2095_v17  ;;  %v1919_v19 = vpop.permute.xlu1 %1918 }
 0xa15   : > { %1924 = vst.msk [vmem:[#allocation2 + $0x8] sm:$0xff] %vm1922_vm13, %v1919_v19 }
 0xa16   : > { %v3250_v20 = vpop.eup %3249 }
 0xa17   : > { %v2098_v21 = vsel %vm900_vm7, %v3250_v20, 0.0 }
 0xa18   : > { %2099 = vadd.xlane.f32.xlu0 %v2098_v21  ;;  %v2380_v21 = vstv %s2336_s8 }
 0xa2e   : > { %2105 = vrot.lane.b32.xlu0 %v3843_v51, %s3522_s14 }
 0xa32   : > { %1916 = vrot.lane.b32.xlu0 %v1834_v53, %s3524_s4  ;;  %v3209_v53 = vld [vmem:[%s4171_s29 + $0x8] sm:$0xff]  }
 0xa9d   : > { %v2097_v22 = vpop.xlane.xlu0 %2096 }
 0xa9e   : > { %3251 = vrcp.f32 %v2097_v22 }
 0xaa1   : > { %v2100_v23 = vpop.xlane.xlu0 %2099 }
 0xaa2   : > { %3253 = vrcp.f32 %v2100_v23 }
 0xaa5   : > { %v2106_v24 = vpop.permute.xlu0 %2105 }
 0xaa6   : > { %3040 = vmatpush3.msra.mxu0 %v2106_v24 }
 0xaa7   : > { %3049 = vmatprep.subr.bf16.mxu0 %v3517_v18 }
 0xaa9   : > { %v1917_v25 = vpop.permute.xlu0 %1916 }
 0xaaa   : > { %1923 = vst.msk [vmem:[#allocation2] sm:$0xff] %vm1922_vm13, %v1917_v25 }
 0xaab   : > { %v3252_v26 = vpop.eup %3251 }
 0xaac   : > { %v2103_v27 = vmul.f32 %v3252_v26, %v3248_v16  ;;  %v2377_v16 = vstv %s2334_s30  ;;  %v3212_v26 = vld [vmem:[%s3792_s13 + $0x10] sm:$0xff]  }
 0xaae   : > { %3042 = vmatmul.mubr.msk.f32.vlgmr.msra.gmra.mxu0 %vm900_vm7, %v2103_v27  ;;  %v3213_v27 = vld [vmem:[%s3792_s13 + $0x8] sm:$0xff]  }
 0xaaf   : > { %v3254_v28 = vpop.eup %3253  ;;  %3053 = vmatprep.mubr.msk.bf16.mxu0 %vm3518_vm2, %v3517_v18  ;;  %3050 = vmatpush3.bf16.msra.mxu0 %v3207_v29 }
 0xab0   : > { %v2104_v51 = vmul.f32 %v3254_v28, %v3250_v20  ;;  %3051 = vmatprep.subr.bf16.mxu0 %v3517_v18  ;;  %v3214_v28 = vld [vmem:[%s3792_s13] sm:$0xff]  }
 0xab2   : > { %3047 = vmatmul.mubr.msk.f32.vlgmr.msra.gmra.mxu1 %vm900_vm7, %v2104_v51  ;;  %v2870_v51 = vld [vmem:[%s4173_s20] ss:$0 sm:$0xff] }
 0xab3   : > { %3061 = vmatprep.mubr.msk.bf16.mxu1 %vm3518_vm2, %v3517_v18  ;;  %3052 = vmatpush3.bf16.msra.mxu0 %v3208_v30 }
 0xab4   : > { %3065 = vmatprep.subr.bf16.mxu0 %v3517_v18  ;;  %3058 = vmatpush3.bf16.msra.mxu1 %v3209_v53 }
 0xab5   : > { %3059 = vmatprep.subr.bf16.mxu1 %v3517_v18 }
 0xab8   : > { %3060 = vmatpush3.bf16.msra.mxu1 %v3210_v54 }
 0xb6e   : > { %v2177_v31 = vpop.f32.mrf.mxu0 }
 0xb6f   : > { %2259 = vrot.lane.b32.xlu0 %v2177_v31, %s3525_s0 }
 0xb70   : > { %v3043_v32 = vpop.f32.mrf.mxu0 }
 0xb72   : > { %v2253_v33 = vpop.f32.mrf.mxu1 }
 0xb73   : > { %2261 = vrot.lane.b32.xlu1 %v2253_v33, %s3525_s0 }
 0xb74   : > { %v3048_v34 = vpop.f32.mrf.mxu1 }
 0xbe1   : > { %v2260_v35 = vpop.permute.xlu0 %2259 }
 0xbe2   : > { %2266 = vst.msk [vmem:[#allocation2] sm:$0xff] %vm2265_vm14, %v2260_v35 }
 0xbe5   : > { %v2262_v36 = vpop.permute.xlu1 %2261 }
 0xbe6   : > { %2267 = vst.msk [vmem:[#allocation2 + $0x8] sm:$0xff] %vm2265_vm14, %v2262_v36 }
 0xbe9   : > { %v2272_v37 = vld [vmem:[#allocation2] sm:$0xff] }
 0xbed   : > { %v2273_v38 = vld [vmem:[#allocation2 + $0x8] sm:$0xff] }
 0xbee   : > { %v2274_v39 = vpack.c.bf16 %v2273_v38, %v2272_v37 }
 0xbf0   : > { %3054 = vmatmul.mubr.msk.bf16.vlgmr.msra.gmra.mxu0 %vm675_vm1, %v2274_v39 }
 0xbf1   : > { %3073 = vmatprep.mubr.msk.bf16.mxu0 %vm3518_vm2, %v3517_v18  ;;  %3066 = vmatpush3.bf16.msra.mxu0 %v3211_v56 }
 0xbf2   : > { %3067 = vmatprep.subr.bf16.mxu0 %v3517_v18 }
 0xbf5   : > { %3068 = vmatpush3.bf16.msra.mxu0 %v3212_v26 }
 0xbf6   : > { %3069 = vmatprep.subr.bf16.mxu0 %v3517_v18 }
 0xbf9   : > { %3070 = vmatpush3.bf16.msra.mxu0 %v3213_v27 }
 0xbfa   : > { %3071 = vmatprep.subr.bf16.mxu0 %v3517_v18  ;;  %v2874_v18 = vld [vmem:[%s653_s2] ss:$0 sm:$0xff] }
 0xbfd   : > { %3072 = vmatpush3.bf16.msra.mxu0 %v3214_v28 }
 0xcb0   : > { %v2324_v40 = vpop.f32.mrf.mxu0 }
 0xcb1   : > { %v4029_v41 = vadd.f32 %v2324_v40, %v3799_v2 }
 0xcb2   : > { %v3055_v58 = vpop.f32.mrf.mxu0 }
 0xcb3   : > { %v2337_v61 = vsel %vm675_vm1, %v4029_v41, 0.0 }
 0xcb4   : > { %2338 = vadd.xlane.f32.xlu0 %v2337_v61  ;;  %v2327_v42 = vpop.f32.mrf.mxu0 }
 0xcb5   : > { %v4034_v62 = vadd.f32 %v2327_v42, %v3801_v3 }
 0xcb6   : > { %v3056_v43 = vpop.f32.mrf.mxu0 }
 0xcb7   : > { %v2340_v44 = vsel %vm675_vm1, %v4034_v62, 0.0 }
 0xcb8   : > { %2341 = vadd.xlane.f32.xlu1 %v2340_v44 }
 0xd3d   : > { %v2339_v45 = vpop.xlane.xlu0 %2338 }
 0xd3e   : > { %v2343_v46 = vmul.f32 0.03125, %v2339_v45 }
 0xd40   : > { %v2345_v2 = vsub.f32 %v4029_v41, %v2343_v46 }
 0xd41   : > { %v2342_v47 = vpop.xlane.xlu1 %2341 }
 0xd42   : > { %v2344_v48 = vmul.f32 0.03125, %v2342_v47  ;;  %v2347_v49 = vmul.f32 %v2345_v2, %v2345_v2 }
 0xd44   : > { %v2346_v59 = vsub.f32 %v4034_v62, %v2344_v48  ;;  %v2349_v3 = vsel %vm675_vm1, %v2347_v49, 0.0 }
 0xd45   : > { %2350 = vadd.xlane.f32.xlu0 %v2349_v3 }
 0xd46   : > { %v2348_v50 = vmul.f32 %v2346_v59, %v2346_v59 }
 0xd48   : > { %v2352_v52 = vsel %vm675_vm1, %v2348_v50, 0.0 }
 0xd49   : > { %2353 = vadd.xlane.f32.xlu0 %v2352_v52 }
 0xdce   : > { %v2351_v57 = vpop.xlane.xlu0 %2350 }
 0xdcf   : > { %v2355_v60 = vmul.f32 0.032258064, %v2351_v57 }
 0xdd1   : > { %3255 = vrsqrt.f32 %v2355_v60  ;;  %vm2359_vm15 = vcmp.eq.f32.partialorder %v2355_v60, inf  ;;  %v2362_v5 = vand.u32 2147483648, %v2355_v60  ;;  %vm2361_vm0 = vcmp.eq.f32.partialorder %v2355_v60, 0.0 }
 0xdd2   : > { %v2354_v63 = vpop.xlane.xlu0 %2353 }
 0xdd3   : > { %v2356_v0 = vmul.f32 0.032258064, %v2354_v63 }
 0xdd5   : > { %3257 = vrsqrt.f32 %v2356_v0  ;;  %vm2366_vm2 = vcmp.eq.f32.partialorder %v2356_v0, inf  ;;  %v2369_v10 = vand.u32 2147483648, %v2356_v0  ;;  %vm2368_vm3 = vcmp.eq.f32.partialorder %v2356_v0, 0.0 }
 0xdde   : > { %v3256_v1 = vpop.eup %3255 }
 0xddf   : > { %v2358_v4 = vmul.f32 %v3256_v1, %v2355_v60 }
 0xde1   : > { %v2360_v6 = vsel %vm2359_vm15, %v2355_v60, %v2358_v4 }
 0xde2   : > { %v3258_v7 = vpop.eup %3257  ;;  %v2363_v9 = vsel %vm2361_vm0, %v2362_v5, %v2360_v6 }
 0xde3   : > { %v2371_v8 = vadd.f32 1e-06, %v2363_v9  ;;  %v2365_v11 = vmul.f32 %v3258_v7, %v2356_v0 }
 0xde5   : > { %3259 = vrcp.f32 %v2371_v8  ;;  %v2367_v12 = vsel %vm2366_vm2, %v2356_v0, %v2365_v11 }
 0xde6   : > { %v2370_v13 = vsel %vm2368_vm3, %v2369_v10, %v2367_v12 }
 0xde7   : > { %v2372_v14 = vadd.f32 1e-06, %v2370_v13 }
 0xde9   : > { %3261 = vrcp.f32 %v2372_v14 }
 0xdf2   : > { %v3260_v55 = vpop.eup %3259 }
 0xdf3   : > { %v2374_v15 = vmul.f32 %v3260_v55, %v2345_v2 }
 0xdf5   : > { %v2378_v20 = vmul.f32 %v2377_v16, %v2374_v15 }
 0xdf6   : > { %v3262_v17 = vpop.eup %3261 }
 0xdf7   : > { %v2376_v19 = vmul.f32 %v3262_v17, %v2346_v59  ;;  %v2381_v23 = vadd.f32 %v2380_v21, %v2378_v20 }
 0xdf9   : > { %v2379_v22 = vmul.f32 %v2377_v16, %v2376_v19 }
 0xdfb   : > { %v2382_v24 = vadd.f32 %v2380_v21, %v2379_v22 }
 0xdfd   : > { %v2387_v25 = vpack.c.bf16 %v2382_v24, %v2381_v23 }
 0xdff   : > { %3062 = vmatmul.mubr.msk.bf16.vlgmr.msra.gmra.mxu1 %vm675_vm1, %v2387_v25 }
 0xebf   : > { %v2444_v29 = vpop.f32.mrf.mxu1 }
 0xec0   : > { %v2445_v31 = vadd.f32 %v2870_v51, %v2444_v29 }
 0xec1   : > { %v3063_v30 = vpop.f32.mrf.mxu1 }
 0xec2   : > { %v2451_v35 = vmax.f32 %v2445_v31, 0.0 }
 0xec3   : > { %v2447_v32 = vpop.f32.mrf.mxu1 }
 0xec4   : > { %v2448_v33 = vadd.f32 %v2870_v51, %v2447_v32 }
 0xec5   : > { %v3064_v34 = vpop.f32.mrf.mxu1 }
 0xec6   : > { %v2452_v36 = vmax.f32 %v2448_v33, 0.0 }
 0xec8   : > { %v2453_v37 = vpack.c.bf16 %v2452_v36, %v2451_v35 }
 0xeca   : > { %3074 = vmatmul.mubr.msk.bf16.vlgmr.msra.gmra.mxu0 %vm2493_vm4, %v2453_v37 }
 0xf8a   : > { %v2531_v38 = vpop.f32.mrf.mxu0 }
 0xf8b   : > { %v2532_v39 = vadd.f32 %v2874_v18, %v2531_v38 }
 0xf8c   : > { %v3075_v40 = vpop.f32.mrf.mxu0 }
 0xf8d   : > { %v2538_v58 = vadd.f32 %v2532_v39, %v4029_v41  ;;  %2543 = sbr.rel (%p2880_p6) target bundleno = 3988 (0xf94), region = 100 }
 0xf8e   : > { %v2534_v61 = vpop.f32.mrf.mxu0 }
 0xf8f   : > { %v2535_v42 = vadd.f32 %v2874_v18, %v2534_v61 }
 0xf90   : > { %v3076_v43 = vpop.f32.mrf.mxu0 }
 0xf91   : > { %v2539_v44 = vadd.f32 %v2535_v42, %v4034_v62 }
 0xf92   : > { %2544 = vst.msk [vmem:[#allocation14] sm:$0xff] %vm675_vm1, %v2538_v58 }
 0xf93   : > { %2545 = vst.msk [vmem:[#allocation14 + $0x8] sm:$0xff] %vm675_vm1, %v2539_v44 }
 0xf94 PF: > { %p2881_p9 = scmp.ne.s32.totalorder %s3495_s24, 1 }
 0xf95   : > { %s2550_s2 = sld [smem:[#allocation12]] (!%p2881_p9) }
 0xf96   : > { %2549 = sbr.rel (%p2881_p9) target bundleno = 4326 (0x10e6), region = 104  ;;  %s2882_s24 = sld [smem:[#allocation12 + $0x1]] (!%p2881_p9) }
 0xf9b   : > { %v2552_v45 = vsel %vm675_vm1, %v2538_v58, 0.0  ;;  %v2555_v41 = vsel %vm675_vm1, %v2539_v44, 0.0  ;;  %v2592_v13 = vstv %s2550_s2 }
 0xf9c   : > { %2553 = vadd.xlane.f32.xlu0 %v2552_v45  ;;  %v2595_v55 = vstv %s2882_s24 }
 0xfa0   : > { %2556 = vadd.xlane.f32.xlu0 %v2555_v41 }
0x1025   : > { %v2554_v46 = vpop.xlane.xlu0 %2553 }
0x1026   : > { %v2558_v2 = vmul.f32 0.03125, %v2554_v46 }
0x1028   : > { %v2560_v62 = vsub.f32 %v2538_v58, %v2558_v2 }
0x1029   : > { %v2557_v47 = vpop.xlane.xlu0 %2556 }
0x102a   : > { %v2559_v48 = vmul.f32 0.03125, %v2557_v47  ;;  %v2562_v49 = vmul.f32 %v2560_v62, %v2560_v62 }
0x102c   : > { %v2561_v59 = vsub.f32 %v2539_v44, %v2559_v48  ;;  %v2564_v3 = vsel %vm675_vm1, %v2562_v49, 0.0 }
0x102d   : > { %2565 = vadd.xlane.f32.xlu1 %v2564_v3 }
0x102e   : > { %v2563_v50 = vmul.f32 %v2561_v59, %v2561_v59 }
0x1030   : > { %v2567_v52 = vsel %vm675_vm1, %v2563_v50, 0.0 }
0x1031   : > { %2568 = vadd.xlane.f32.xlu1 %v2567_v52 }
0x10b6   : > { %v2566_v53 = vpop.xlane.xlu1 %2565 }
0x10b7   : > { %v2570_v54 = vmul.f32 0.032258064, %v2566_v53 }
0x10b9   : > { %3263 = vrsqrt.f32 %v2570_v54  ;;  %vm2574_vm5 = vcmp.eq.f32.partialorder %v2570_v54, inf  ;;  %v2577_v0 = vand.u32 2147483648, %v2570_v54  ;;  %vm2576_vm6 = vcmp.eq.f32.partialorder %v2570_v54, 0.0 }
0x10ba   : > { %v2569_v56 = vpop.xlane.xlu1 %2568 }
0x10bb   : > { %v2571_v57 = vmul.f32 0.032258064, %v2569_v56 }
0x10bd   : > { %3265 = vrsqrt.f32 %v2571_v57  ;;  %vm2581_vm7 = vcmp.eq.f32.partialorder %v2571_v57, inf  ;;  %v2584_v9 = vand.u32 2147483648, %v2571_v57  ;;  %vm2583_vm8 = vcmp.eq.f32.partialorder %v2571_v57, 0.0 }
0x10c6   : > { %v3264_v60 = vpop.eup %3263 }
0x10c7   : > { %v2573_v63 = vmul.f32 %v3264_v60, %v2570_v54 }
0x10c9   : > { %v2575_v1 = vsel %vm2574_vm5, %v2570_v54, %v2573_v63 }
0x10ca   : > { %v3266_v4 = vpop.eup %3265  ;;  %v2578_v5 = vsel %vm2576_vm6, %v2577_v0, %v2575_v1 }
0x10cb   : > { %v2586_v6 = vadd.f32 1e-06, %v2578_v5  ;;  %v2580_v7 = vmul.f32 %v3266_v4, %v2571_v57 }
0x10cd   : > { %3267 = vrcp.f32 %v2586_v6  ;;  %v2582_v8 = vsel %vm2581_vm7, %v2571_v57, %v2580_v7 }
0x10ce   : > { %v2585_v11 = vsel %vm2583_vm8, %v2584_v9, %v2582_v8 }
0x10cf   : > { %v2587_v10 = vadd.f32 1e-06, %v2585_v11 }
0x10d1   : > { %3269 = vrcp.f32 %v2587_v10 }
0x10da   : > { %v3268_v12 = vpop.eup %3267 }
0x10db   : > { %v2589_v14 = vmul.f32 %v3268_v12, %v2560_v62 }
0x10dd   : > { %v2593_v15 = vmul.f32 %v2592_v13, %v2589_v14 }
0x10de   : > { %v3270_v16 = vpop.eup %3269 }
0x10df   : > { %v2596_v17 = vadd.f32 %v2595_v55, %v2593_v15  ;;  %v2591_v19 = vmul.f32 %v3270_v16, %v2561_v59 }
0x10e1   : > { %2598 = vst.msk [vmem:[#allocation14] sm:$0xff] %vm675_vm1, %v2596_v17  ;;  %v2594_v20 = vmul.f32 %v2592_v13, %v2591_v19 }
0x10e3   : > { %v2597_v21 = vadd.f32 %v2595_v55, %v2594_v20 }
0x10e5   : > { %2599 = vst.msk [vmem:[#allocation14 + $0x8] sm:$0xff] %vm675_vm1, %v2597_v21 }
0x10e6 PF: > { %p3130_p10 = scmp.eq.s32.totalorder %s3622_s27, 1  ;;  %s3526_s28 = smov [#allocation14]  }
0x10e7   : > { %s2609_s14 = sshll.u32 %s3526_s28, 4  ;;  %s2610_s14 = int_to_ptr.vmem [resolvable:$true] %s2609_s14 }
0x10e8   : > { %s3409_s4 = scalar_lea.vmem %s2610_s14, 256  ;;  %p3416_p3 = scmp.lt.s32.totalorder %s2610_s14, %s2610_s14 }
0x10e9   : > { %p3410_p11 = scmp.ne.s32.totalorder %s2610_s14, %s3409_s4  ;;  %p3417_p1 = scmp.lt.s32.totalorder %s3409_s4, %s3409_s4 }
0x10eb   : > { %p3411_p12 = pnand %p3410_p11, %p3130_p10  ;;  %p3418_p5 = por %p3417_p1, %p3416_p3 }
0x10ed   : > { %p3412_p2 = pneg %p3411_p12 }
0x10ef   : > { %p3419_p4 = pnand %p3418_p5, %p3412_p2 }
0x10f1   : > { %3422 = shalt.err (!%p3419_p4)
}
0x10f2   : > { %s3527_s21 = smov 128   ;;  %s4175_s29 = sld [smem:[#allocation30_spill]] }
0x10f8   : > { %3098 = dma.vmem_to_hbm [thread:$0]  (%p3130_p10), %s2610_s14, 256, %s4175_s29, [#allocation5], %s3527_s21, %s3527_s21, %s3523_s5  }
0x10f9   : > { %3478 = dma.done.wait (%p3130_p10), [#allocation5], 256  }
0x10fa   : > { %3480 = vsyncadd (%p3130_p10), [#allocation5], 4294967040 }
0x10fb PF: > { %s27_s26 = sadd.s32 1, %s3503_s26   ;;  %s4176_s16 = sld [smem:[#allocation22_spill]] }
0x10fc   : > { %p24_p8 = scmp.ge.s32.totalorder %s27_s26, 4   ;;  %s4177_s12 = sld [smem:[#allocation21_spill]] }
0x10fd   : > { %s4178_s21 = smov %s3487_s22  ;;  %s4179_s22 = smov %s3491_s23 }
0x10fe   : > { %s4181_s24 = smov %s3499_s25  ;;  %26 = sbr.rel (!%p24_p8) target bundleno = 16 (0x10), region = 165 }
0x1101   : > { %s4180_s23 = smov %s4176_s16 }
0x1102   : > { %s4182_s25 = smov %s4177_s12 }
0x1103   :  { %2625 = vsyncpa [#allocation4], 1 }
0x1104   :  { %2627 = vsyncpa [#allocation4 + $0x1], 1 }
0x1105   :  { %2628 = vsyncpa [#allocation8], 1 }
0x1106   :  { %2629 = vsyncpa [#allocation5], 1 }
0x1107   :  { %2631 = vsyncpa [#allocation5 + $0x1], 1 }
0x1108   :  { %2632 = vsyncpa [#allocation6], 1 }
0x1109   :  { %2634 = vsyncpa [#allocation6 + $0x1], 1 }
0x110a   :  { %2635 = vsyncpa [#allocation13], 1 }

</bundles_post_ra>
